<compile_context>
chip_gen: v7x
topology: tpu7x:2x2x1
jax: 0.10.0
libtpu: 0.0.40
codegen_flags: <defaults>
</compile_context>

<pallas_src>
import functools
import math

import jax
import jax.numpy as jnp
from jax import lax
from jax.experimental import pallas as pl
from jax.experimental.pallas import tpu as pltpu


def _round_up(v, m):
    return (v + m - 1) // m * m


def _time_lstm_kernel(x_ref, cm0_ref, wh_ref, wx_ref, b_ref, wci_ref, wcf_ref, wco_ref,
                      h_out_ref, c_out_ref, h_s, c_s, xg_s,
                      *, hp, t_chunk, bt, xp, n_valid, mask_tail, unroll):
    """One grid step == one batch tile x one chunk of `t_chunk` timesteps."""
    tc = pl.program_id(1)          # time-chunk index (inner, "arbitrary" axis)

    @pl.when(tc == 0)
    def _():                        # fresh recurrence for every batch tile
        h_s[...] = jnp.zeros_like(h_s)
        c_s[...] = cm0_ref[...]

    wh = wh_ref[...]                # (Hp, 4Hp) recurrent weights, bf16 or f32
    wdt = wh.dtype

    # ---- hoisted input projection: one big MXU dot for the whole chunk ----------
    # M = T*Bt rows -> good MXU fill, and it pipelines off the serial h-chain.
    x2d = x_ref[...].reshape(t_chunk * bt, xp)
    xg = jnp.dot(x2d, wx_ref[...], preferred_element_type=jnp.float32)
    xg_s[...] = xg.reshape(t_chunk, bt, 4 * hp) + b_ref[...]   # bias folded once/chunk

    # Peepholes: broadcast ONCE per grid step (outside the recurrence loop).
    wci = jnp.broadcast_to(wci_ref[...], (bt, hp))
    wcf = jnp.broadcast_to(wcf_ref[...], (bt, hp))
    wco = jnp.broadcast_to(wco_ref[...], (bt, hp))

    def body(t, carry):
        h, c = carry                                             # (Bt, Hp) f32
        # Per-step matmul is ONLY h @ Wh (K = Hp); x-part comes from the scratch.
        g = xg_s[t] + jnp.dot(h.astype(wdt), wh,
                              preferred_element_type=jnp.float32)   # (Bt, 4Hp)
        ig = jax.nn.sigmoid(g[:, 0 * hp:1 * hp] + wci * c)
        fg = jax.nn.sigmoid(g[:, 1 * hp:2 * hp] + wcf * c)
        inn = jnp.tanh(g[:, 2 * hp:3 * hp])
        c_new = fg * c + ig * inn
        og = jax.nn.sigmoid(g[:, 3 * hp:4 * hp] + wco * c_new)   # peephole on NEW cell
        h_new = og * jnp.tanh(c_new)
        if mask_tail:               # padded tail timesteps: freeze the state
            valid = (tc * t_chunk + t) < n_valid
            h_new = jnp.where(valid, h_new, h)
            c_new = jnp.where(valid, c_new, c)
        return h_new, c_new

    h, c = lax.fori_loop(0, t_chunk, body, (h_s[...], c_s[...]), unroll=unroll)
    h_s[...] = h
    c_s[...] = c

    @pl.when(tc == pl.num_programs(1) - 1)
    def _():
        h_out_ref[...] = h
        c_out_ref[...] = c


def _const_spec(shape):
    """BlockSpec for a grid-invariant operand; single-buffered when supported."""
    index_map = lambda b_i, t_i: tuple(0 for _ in shape)
    try:
        return pl.BlockSpec(shape, index_map, pipeline_mode=pl.Buffered(1))
    except Exception:               # older jax without pipeline_mode / Buffered(1)
        return pl.BlockSpec(shape, index_map)


@functools.partial(jax.jit,
                   static_argnames=("weight_dtype", "max_time_chunk", "batch_tile"))
def time_lstm_forward(x, cm0, params, *, weight_dtype=jnp.bfloat16,
                      max_time_chunk=16, batch_tile=256):
    """x: [B, N, X], cm0: [B, H], params: per-gate weights as in the module.

    Returns (h [B, H], cm [B, H, 1]) matching the PyTorch module outputs.
    """
    B, N, X = x.shape
    H = params["ig_w_h"].shape[0]
    f32 = jnp.float32
    wbytes = jnp.dtype(weight_dtype).itemsize

    # ---- padding / tiling ---------------------------------------------------------
    sub = 16 if wbytes == 2 else 8            # sublane packing of the matmul operand
    Hp = _round_up(H, 128)                    # lane multiple -> lane-aligned gate slices
    Xp = _round_up(X, 128)
    Bt = min(_round_up(B, sub), _round_up(batch_tile, sub))   # batch tile (rows/step)
    Bp = _round_up(B, Bt)                     # total padded batch, multiple of Bt
    n_btiles = Bp // Bt
    T = min(N, max_time_chunk)                # time chunk (amortizes grid-step cost)
    n_chunks = -(-N // T)
    Np = n_chunks * T
    mask_tail = (Np != N)

    # ---- pack weights: gates along lanes [ig | fg | in | og], each Hp wide --------
    # Padded rows/cols, bias and peepholes are zero, so padded cell/hidden lanes
    # provably stay 0 and never leak into real lanes through the matmuls.
    def pack(g):
        wh_col = jnp.zeros((Hp, Hp), f32).at[:H, :H].set(params[g + "_w_h"].T.astype(f32))
        wx_col = jnp.zeros((Xp, Hp), f32).at[:X, :H].set(params[g + "_w_x"].T.astype(f32))
        b_col = jnp.zeros((1, Hp), f32).at[0, :H].set(params[g + "_b"][:, 0].astype(f32))
        return wh_col, wx_col, b_col

    whs, wxs, bcs = zip(*(pack(g) for g in ("ig", "fg", "in", "og")))
    Wh = jnp.concatenate(whs, axis=1).astype(weight_dtype)        # (Hp, 4Hp)
    Wx = jnp.concatenate(wxs, axis=1).astype(weight_dtype)        # (Xp, 4Hp)
    bias = jnp.concatenate(bcs, axis=1)                           # (1, 4Hp) f32

    def peephole(p):
        return jnp.zeros((1, Hp), f32).at[0, :H].set(p[:, 0].astype(f32))

    wci = peephole(params["ig_w_c"])
    wcf = peephole(params["fg_w_c"])
    wco = peephole(params["og_w_cn"])

    # time-major, batch/feature zero-padded, MXU operand dtype
    x_seq = jnp.zeros((Np, Bp, Xp), weight_dtype).at[:N, :B, :X].set(
        jnp.transpose(x, (1, 0, 2)).astype(weight_dtype))
    cm0_p = jnp.zeros((Bp, Hp), f32).at[:B, :H].set(cm0.astype(f32))

    grid_spec = pltpu.PrefetchScalarGridSpec(
        num_scalar_prefetch=0,
        grid=(n_btiles, n_chunks),                        # (parallel, serial recurrence)
        in_specs=[
            pl.BlockSpec((T, Bt, Xp), lambda b_i, t_i: (t_i, b_i, 0)),   # x chunk
            pl.BlockSpec((Bt, Hp), lambda b_i, t_i: (b_i, 0)),           # cm0 tile
            _const_spec((Hp, 4 * Hp)),                                   # Wh (1 buffer)
            _const_spec((Xp, 4 * Hp)),                                   # Wx (1 buffer)
            _const_spec((1, 4 * Hp)),                                    # bias
            _const_spec((1, Hp)),                                        # wci
            _const_spec((1, Hp)),                                        # wcf
            _const_spec((1, Hp)),                                        # wco
        ],
        out_specs=[
            pl.BlockSpec((Bt, Hp), lambda b_i, t_i: (b_i, 0)),           # h
            pl.BlockSpec((Bt, Hp), lambda b_i, t_i: (b_i, 0)),           # cm
        ],
        scratch_shapes=[
            pltpu.VMEM((Bt, Hp), jnp.float32),            # h state (resident)
            pltpu.VMEM((Bt, Hp), jnp.float32),            # c state (resident)
            pltpu.VMEM((T, Bt, 4 * Hp), jnp.float32),     # hoisted x-projection
        ],
    )

    # ---- VMEM budget & cost estimate ----------------------------------------------
    resident = (Hp * 4 * Hp * wbytes            # Wh (single buffer)
                + Xp * 4 * Hp * wbytes          # Wx (single buffer)
                + 7 * Hp * 4                    # bias + peepholes
                + 2 * T * Bt * Xp * wbytes      # x chunk, double buffered
                + 2 * Bt * Hp * 4               # cm0 (2 buffers)
                + 2 * 2 * Bt * Hp * 4           # h/c outputs (2 buffers each)
                + 2 * Bt * Hp * 4               # h/c state scratch
                + T * Bt * 4 * Hp * 4)          # x-projection scratch
    vmem_limit = max(16 << 20, min(int(1.4 * resident) + (4 << 20), 96 << 20))

    cost = pl.CostEstimate(
        flops=(2 * Np * Bp * Xp * 4 * Hp            # x projection
               + 2 * Np * Bp * Hp * 4 * Hp          # recurrent projection
               + 10 * Np * Bp * Hp),                # gate elementwise
        transcendentals=5 * Np * Bp * Hp,
        bytes_accessed=(Np * Bp * Xp * wbytes + (Hp + Xp) * 4 * Hp * wbytes
                        + 7 * Hp * 4 + 3 * Bp * Hp * 4),
    )

    unroll = True if Hp <= 512 else 2               # vreg-pressure guard at large Hp
    kernel = functools.partial(_time_lstm_kernel, hp=Hp, t_chunk=T, bt=Bt, xp=Xp,
                               n_valid=N, mask_tail=mask_tail, unroll=unroll)
    h, cm = pl.pallas_call(
        kernel,
        out_shape=(jax.ShapeDtypeStruct((Bp, Hp), f32),
                   jax.ShapeDtypeStruct((Bp, Hp), f32)),
        grid_spec=grid_spec,
        compiler_params=pltpu.CompilerParams(
            dimension_semantics=("parallel", "arbitrary"),   # batch tiles || , time serial
            vmem_limit_bytes=vmem_limit),
        cost_estimate=cost,
    )(x_seq, cm0_p, Wh, Wx, bias, wci, wcf, wco)

    return h[:B, :H], cm[:B, :H][..., None]    # h: [B,H], cm: [B,H,1] as in the module


def time_lstm_reference(x, cm0, params):
    """Pure-JAX replica of the PyTorch forward (ALEX_GRAVES branch), for checking."""
    B, N, X = x.shape
    H = params["ig_w_h"].shape[0]
    p = {k: v.astype(jnp.float32) for k, v in params.items()}
    h = jnp.zeros((B, H, 1), jnp.float32)
    cm = cm0[..., None].astype(jnp.float32)
    x4 = x.astype(jnp.float32)[..., None]      # [B, N, X, 1]
    for s in range(N):
        x_cur = x4[:, s]                       # [B, X, 1]
        ig = jax.nn.sigmoid(p["ig_w_c"] * cm + p["ig_w_h"] @ h + p["ig_w_x"] @ x_cur + p["ig_b"])
        fg = jax.nn.sigmoid(p["fg_w_c"] * cm + p["fg_w_h"] @ h + p["fg_w_x"] @ x_cur + p["fg_b"])
        inn = jnp.tanh(p["in_w_h"] @ h + p["in_w_x"] @ x_cur + p["in_b"])
        cm = fg * cm + ig * inn
        og = jax.nn.sigmoid(p["og_w_cn"] * cm + p["og_w_h"] @ h + p["og_w_x"] @ x_cur + p["og_b"])
        h = og * jnp.tanh(cm)
    return jnp.squeeze(h, -1), cm


def make_params(key, in_features, out_features):
    """Deterministic init mirroring the module: uniform(-1/sqrt(H), 1/sqrt(H))."""
    H, X = out_features, in_features
    stdv = 1.0 / math.sqrt(H)
    shapes = {
        "fg_w_c": (H, 1), "fg_w_h": (H, H), "fg_w_x": (H, X), "fg_b": (H, 1),
        "ig_w_c": (H, 1), "ig_w_h": (H, H), "ig_w_x": (H, X), "ig_b": (H, 1),
        "in_w_h": (H, H), "in_w_x": (H, X), "in_b": (H, 1),
        "og_w_cn": (H, 1), "og_w_h": (H, H), "og_w_x": (H, X), "og_b": (H, 1),
    }
    params = {}
    keys = jax.random.split(key, len(shapes))
    for k, (name, shp) in zip(keys, sorted(shapes.items())):
        params[name] = jax.random.uniform(k, shp, jnp.float32, minval=-stdv, maxval=stdv)
    return params


if __name__ == "__main__":
    root = jax.random.PRNGKey(0)

    # ---- config 1: canonical small shape -------------------------------------------
    B, N, X, H = 2, 8, 4, 32
    k_params, k_x, k_c = jax.random.split(root, 3)
    params = make_params(k_params, X, H)
    x = jax.random.normal(k_x, (B, N, X), jnp.float32)
    cm0 = 0.1 * jax.random.normal(k_c, (B, H), jnp.float32)     # exercises the cm input

    h_r, cm_r = time_lstm_reference(x, cm0, params)

    # f32-weight path: tight numerical check against the pure-JAX reference.
    h_k, cm_k = time_lstm_forward(x, cm0, params, weight_dtype=jnp.float32)
    jax.block_until_ready((h_k, cm_k))
    assert h_k.shape == (B, H) and cm_k.shape == (B, H, 1)
    assert jnp.allclose(h_k, h_r, atol=1e-4, rtol=1e-4)
    assert jnp.allclose(cm_k, cm_r, atol=1e-4, rtol=1e-4)

    # bf16-weight path (default, MXU-native): looser tolerance for the bf16 operands.
    h_b, cm_b = time_lstm_forward(x, cm0, params)
    jax.block_until_ready((h_b, cm_b))
    assert jnp.allclose(h_b, h_r, atol=5e-2, rtol=0)
    assert jnp.allclose(cm_b, cm_r, atol=5e-2, rtol=0)

    # ---- config 2: ragged shapes + non-divisible N (exercises tail masking) --------
    B2, N2, X2, H2 = 3, 19, 5, 20
    k_params2, k_x2 = jax.random.split(jax.random.fold_in(root, 1))
    params2 = make_params(k_params2, X2, H2)
    x2 = jax.random.normal(k_x2, (B2, N2, X2), jnp.float32)
    cm02 = jnp.zeros((B2, H2), jnp.float32)                      # module default cm=None
    h_k2, cm_k2 = time_lstm_forward(x2, cm02, params2, weight_dtype=jnp.float32,
                                    max_time_chunk=8)            # 3 chunks, 5 masked steps
    jax.block_until_ready((h_k2, cm_k2))
    h_r2, cm_r2 = time_lstm_reference(x2, cm02, params2)
    assert h_k2.shape == (B2, H2) and cm_k2.shape == (B2, H2, 1)
    assert jnp.allclose(h_k2, h_r2, atol=1e-4, rtol=1e-4)
    assert jnp.allclose(cm_k2, cm_r2, atol=1e-4, rtol=1e-4)

    # ---- config 3: multiple batch tiles (exercises the parallel batch grid axis) ---
    B3, N3, X3, H3 = 18, 5, 3, 16
    k_params3, k_x3, k_c3 = jax.random.split(jax.random.fold_in(root, 2), 3)
    params3 = make_params(k_params3, X3, H3)
    x3 = jax.random.normal(k_x3, (B3, N3, X3), jnp.float32)
    cm03 = 0.1 * jax.random.normal(k_c3, (B3, H3), jnp.float32)
    h_k3, cm_k3 = time_lstm_forward(x3, cm03, params3, weight_dtype=jnp.float32,
                                    batch_tile=8)                # 3 batch tiles of 8
    jax.block_until_ready((h_k3, cm_k3))
    h_r3, cm_r3 = time_lstm_reference(x3, cm03, params3)
    assert h_k3.shape == (B3, H3) and cm_k3.shape == (B3, H3, 1)
    assert jnp.allclose(h_k3, h_r3, atol=1e-4, rtol=1e-4)
    assert jnp.allclose(cm_k3, cm_r3, atol=1e-4, rtol=1e-4)

    print("KERNEL_OK")
</pallas_src>

<mosaic_0001>
module attributes {stable_mosaic.version = 11 : i64} {
  func.func @_time_lstm_kernel(%arg0: i32, %arg1: i32, %arg2: memref<8x8x128xf32, #tpu.memory_space<vmem>>, %arg3: memref<8x128xf32, #tpu.memory_space<vmem>>, %arg4: memref<128x512xf32, #tpu.memory_space<vmem>>, %arg5: memref<128x512xf32, #tpu.memory_space<vmem>>, %arg6: memref<1x512xf32, #tpu.memory_space<vmem>>, %arg7: memref<1x128xf32, #tpu.memory_space<vmem>>, %arg8: memref<1x128xf32, #tpu.memory_space<vmem>>, %arg9: memref<1x128xf32, #tpu.memory_space<vmem>>, %arg10: memref<8x128xf32, #tpu.memory_space<vmem>>, %arg11: memref<8x128xf32, #tpu.memory_space<vmem>>, %arg12: memref<8x128xf32, #tpu.memory_space<vmem>>, %arg13: memref<8x128xf32, #tpu.memory_space<vmem>>, %arg14: memref<8x8x512xf32, #tpu.memory_space<vmem>>) attributes {dimension_semantics = [#tpu.dimension_semantics<parallel>, #tpu.dimension_semantics<arbitrary>], iteration_bounds = array<i64: 1, 1>, scalar_prefetch = 0 : i64, scratch_operands = 3 : i64, tpu.core_type = #tpu.core_type<tc>, window_params = [{transform_indices = @transform_0, window_bounds = array<i64: 8, 8, 128>}, {transform_indices = @transform_1, window_bounds = array<i64: 8, 128>}, {pipeline_mode = #tpu.pipeline_mode<synchronous>, transform_indices = @transform_2, window_bounds = array<i64: 128, 512>}, {pipeline_mode = #tpu.pipeline_mode<synchronous>, transform_indices = @transform_3, window_bounds = array<i64: 128, 512>}, {pipeline_mode = #tpu.pipeline_mode<synchronous>, transform_indices = @transform_4, window_bounds = array<i64: 1, 512>}, {pipeline_mode = #tpu.pipeline_mode<synchronous>, transform_indices = @transform_5, window_bounds = array<i64: 1, 128>}, {pipeline_mode = #tpu.pipeline_mode<synchronous>, transform_indices = @transform_6, window_bounds = array<i64: 1, 128>}, {pipeline_mode = #tpu.pipeline_mode<synchronous>, transform_indices = @transform_7, window_bounds = array<i64: 1, 128>}, {transform_indices = @transform_8, window_bounds = array<i64: 8, 128>}, {transform_indices = @transform_9, window_bounds = array<i64: 8, 128>}]} {
    %c0_i32 = arith.constant 0 : i32
    %0 = arith.cmpi eq, %arg1, %c0_i32 : i32
    %1 = arith.extui %0 : i1 to i32
    %c0_i32_0 = arith.constant 0 : i32
    %2 = arith.cmpi ne, %1, %c0_i32_0 : i32
    scf.if %2 {
      %cst_77 = arith.constant 0.000000e+00 : f32
      %318 = vector.broadcast %cst_77 : f32 to vector<8x128xf32>
      %c0_78 = arith.constant 0 : index
      %c0_79 = arith.constant 0 : index
      %319 = vector.load %arg12[%c0_78, %c0_79] : memref<8x128xf32, #tpu.memory_space<vmem>>, vector<8x128xf32>
      tpu.vector_store %arg12[%c0_78, %c0_79], %318 {strides = array<i32>} : memref<8x128xf32, #tpu.memory_space<vmem>>, vector<8x128xf32>,
      %c0_80 = arith.constant 0 : index
      %c0_81 = arith.constant 0 : index
      %320 = vector.load %arg3[%c0_80, %c0_81] : memref<8x128xf32, #tpu.memory_space<vmem>>, vector<8x128xf32>
      %c0_82 = arith.constant 0 : index
      %c0_83 = arith.constant 0 : index
      %321 = vector.load %arg13[%c0_82, %c0_83] : memref<8x128xf32, #tpu.memory_space<vmem>>, vector<8x128xf32>
      tpu.vector_store %arg13[%c0_82, %c0_83], %320 {strides = array<i32>} : memref<8x128xf32, #tpu.memory_space<vmem>>, vector<8x128xf32>,
    } else {
    }
    %c0 = arith.constant 0 : index
    %c0_1 = arith.constant 0 : index
    %3 = vector.load %arg4[%c0, %c0_1] : memref<128x512xf32, #tpu.memory_space<vmem>>, vector<128x512xf32>
    %c0_2 = arith.constant 0 : index
    %c0_3 = arith.constant 0 : index
    %c0_4 = arith.constant 0 : index
    %4 = vector.load %arg2[%c0_2, %c0_3, %c0_4] : memref<8x8x128xf32, #tpu.memory_space<vmem>>, vector<8x8x128xf32>
    %5 = vector.shape_cast %4 : vector<8x8x128xf32> to vector<64x128xf32>
    %c0_5 = arith.constant 0 : index
    %c0_6 = arith.constant 0 : index
    %6 = vector.load %arg5[%c0_5, %c0_6] : memref<128x512xf32, #tpu.memory_space<vmem>>, vector<128x512xf32>
    %cst = arith.constant dense<0.000000e+00> : vector<64x512xf32>
    %7 = tpu.matmul %5, %6, %cst {dimension_numbers = #tpu.dot_dimension_numbers<[1], [0], [0], [1], [0, 0, 1, 1], [], []>} : vector<64x128xf32>, vector<128x512xf32>, vector<64x512xf32> -> vector<64x512xf32>
    %8 = vector.shape_cast %7 : vector<64x512xf32> to vector<8x8x512xf32>
    %c0_7 = arith.constant 0 : index
    %c0_8 = arith.constant 0 : index
    %9 = vector.load %arg6[%c0_7, %c0_8] : memref<1x512xf32, #tpu.memory_space<vmem>>, vector<1x512xf32>
    %10 = vector.shape_cast %9 : vector<1x512xf32> to vector<1x1x512xf32>
    %11 = vector.broadcast %10 : vector<1x1x512xf32> to vector<8x8x512xf32>
    %12 = arith.addf %8, %11 : vector<8x8x512xf32>
    %c0_9 = arith.constant 0 : index
    %c0_10 = arith.constant 0 : index
    %c0_11 = arith.constant 0 : index
    %13 = vector.load %arg14[%c0_9, %c0_10, %c0_11] : memref<8x8x512xf32, #tpu.memory_space<vmem>>, vector<8x8x512xf32>
    tpu.vector_store %arg14[%c0_9, %c0_10, %c0_11], %12 {strides = array<i32>} : memref<8x8x512xf32, #tpu.memory_space<vmem>>, vector<8x8x512xf32>,
    %c0_12 = arith.constant 0 : index
    %c0_13 = arith.constant 0 : index
    %14 = vector.load %arg7[%c0_12, %c0_13] : memref<1x128xf32, #tpu.memory_space<vmem>>, vector<1x128xf32>
    %15 = vector.shape_cast %14 : vector<1x128xf32> to vector<1x128xf32>
    %16 = vector.broadcast %15 : vector<1x128xf32> to vector<8x128xf32>
    %c0_14 = arith.constant 0 : index
    %c0_15 = arith.constant 0 : index
    %17 = vector.load %arg8[%c0_14, %c0_15] : memref<1x128xf32, #tpu.memory_space<vmem>>, vector<1x128xf32>
    %18 = vector.shape_cast %17 : vector<1x128xf32> to vector<1x128xf32>
    %19 = vector.broadcast %18 : vector<1x128xf32> to vector<8x128xf32>
    %c0_16 = arith.constant 0 : index
    %c0_17 = arith.constant 0 : index
    %20 = vector.load %arg9[%c0_16, %c0_17] : memref<1x128xf32, #tpu.memory_space<vmem>>, vector<1x128xf32>
    %21 = vector.shape_cast %20 : vector<1x128xf32> to vector<1x128xf32>
    %22 = vector.broadcast %21 : vector<1x128xf32> to vector<8x128xf32>
    %c0_18 = arith.constant 0 : index
    %c0_19 = arith.constant 0 : index
    %23 = vector.load %arg12[%c0_18, %c0_19] : memref<8x128xf32, #tpu.memory_space<vmem>>, vector<8x128xf32>
    %c0_20 = arith.constant 0 : index
    %c0_21 = arith.constant 0 : index
    %24 = vector.load %arg13[%c0_20, %c0_21] : memref<8x128xf32, #tpu.memory_space<vmem>>, vector<8x128xf32>
    %c0_i32_22 = arith.constant 0 : i32
    %25 = arith.index_cast %c0_i32_22 : i32 to index
    %c0_23 = arith.constant 0 : index
    %c0_24 = arith.constant 0 : index
    %26 = vector.load %arg14[%25, %c0_23, %c0_24] : memref<8x8x512xf32, #tpu.memory_space<vmem>>, vector<1x8x512xf32>
    %27 = vector.shape_cast %26 : vector<1x8x512xf32> to vector<8x512xf32>
    %cst_25 = arith.constant dense<0.000000e+00> : vector<8x512xf32>
    %28 = tpu.matmul %23, %3, %cst_25 {dimension_numbers = #tpu.dot_dimension_numbers<[1], [0], [0], [1], [0, 0, 1, 1], [], []>} : vector<8x128xf32>, vector<128x512xf32>, vector<8x512xf32> -> vector<8x512xf32>
    %29 = arith.addf %27, %28 : vector<8x512xf32>
    %30 = vector.extract_strided_slice %29 {offsets = [0, 0], sizes = [8, 128], strides = [1, 1]} : vector<8x512xf32> to vector<8x128xf32>
    %31 = arith.mulf %16, %24 : vector<8x128xf32>
    %32 = arith.addf %30, %31 : vector<8x128xf32>
    %33 = arith.negf %32 : vector<8x128xf32>
    %34 = math.exp %33 : vector<8x128xf32>
    %cst_26 = arith.constant 1.000000e+00 : f32
    %35 = vector.broadcast %cst_26 : f32 to vector<8x128xf32>
    %36 = arith.addf %35, %34 : vector<8x128xf32>
    %37 = arith.divf %35, %36 : vector<8x128xf32>
    %38 = vector.extract_strided_slice %29 {offsets = [0, 128], sizes = [8, 128], strides = [1, 1]} : vector<8x512xf32> to vector<8x128xf32>
    %39 = arith.mulf %19, %24 : vector<8x128xf32>
    %40 = arith.addf %38, %39 : vector<8x128xf32>
    %41 = arith.negf %40 : vector<8x128xf32>
    %42 = math.exp %41 : vector<8x128xf32>
    %cst_27 = arith.constant 1.000000e+00 : f32
    %43 = vector.broadcast %cst_27 : f32 to vector<8x128xf32>
    %44 = arith.addf %43, %42 : vector<8x128xf32>
    %45 = arith.divf %43, %44 : vector<8x128xf32>
    %46 = vector.extract_strided_slice %29 {offsets = [0, 256], sizes = [8, 128], strides = [1, 1]} : vector<8x512xf32> to vector<8x128xf32>
    %47 = math.tanh %46 : vector<8x128xf32>
    %48 = arith.mulf %45, %24 : vector<8x128xf32>
    %49 = arith.mulf %37, %47 : vector<8x128xf32>
    %50 = arith.addf %48, %49 : vector<8x128xf32>
    %51 = vector.extract_strided_slice %29 {offsets = [0, 384], sizes = [8, 128], strides = [1, 1]} : vector<8x512xf32> to vector<8x128xf32>
    %52 = arith.mulf %22, %50 : vector<8x128xf32>
    %53 = arith.addf %51, %52 : vector<8x128xf32>
    %54 = arith.negf %53 : vector<8x128xf32>
    %55 = math.exp %54 : vector<8x128xf32>
    %cst_28 = arith.constant 1.000000e+00 : f32
    %56 = vector.broadcast %cst_28 : f32 to vector<8x128xf32>
    %57 = arith.addf %56, %55 : vector<8x128xf32>
    %58 = arith.divf %56, %57 : vector<8x128xf32>
    %59 = math.tanh %50 : vector<8x128xf32>
    %60 = arith.mulf %58, %59 : vector<8x128xf32>
    %c1_i32 = arith.constant 1 : i32
    %61 = arith.index_cast %c1_i32 : i32 to index
    %c0_29 = arith.constant 0 : index
    %c0_30 = arith.constant 0 : index
    %62 = vector.load %arg14[%61, %c0_29, %c0_30] : memref<8x8x512xf32, #tpu.memory_space<vmem>>, vector<1x8x512xf32>
    %63 = vector.shape_cast %62 : vector<1x8x512xf32> to vector<8x512xf32>
    %cst_31 = arith.constant dense<0.000000e+00> : vector<8x512xf32>
    %64 = tpu.matmul %60, %3, %cst_31 {dimension_numbers = #tpu.dot_dimension_numbers<[1], [0], [0], [1], [0, 0, 1, 1], [], []>} : vector<8x128xf32>, vector<128x512xf32>, vector<8x512xf32> -> vector<8x512xf32>
    %65 = arith.addf %63, %64 : vector<8x512xf32>
    %66 = vector.extract_strided_slice %65 {offsets = [0, 0], sizes = [8, 128], strides = [1, 1]} : vector<8x512xf32> to vector<8x128xf32>
    %67 = arith.mulf %16, %50 : vector<8x128xf32>
    %68 = arith.addf %66, %67 : vector<8x128xf32>
    %69 = arith.negf %68 : vector<8x128xf32>
    %70 = math.exp %69 : vector<8x128xf32>
    %cst_32 = arith.constant 1.000000e+00 : f32
    %71 = vector.broadcast %cst_32 : f32 to vector<8x128xf32>
    %72 = arith.addf %71, %70 : vector<8x128xf32>
    %73 = arith.divf %71, %72 : vector<8x128xf32>
    %74 = vector.extract_strided_slice %65 {offsets = [0, 128], sizes = [8, 128], strides = [1, 1]} : vector<8x512xf32> to vector<8x128xf32>
    %75 = arith.mulf %19, %50 : vector<8x128xf32>
    %76 = arith.addf %74, %75 : vector<8x128xf32>
    %77 = arith.negf %76 : vector<8x128xf32>
    %78 = math.exp %77 : vector<8x128xf32>
    %cst_33 = arith.constant 1.000000e+00 : f32
    %79 = vector.broadcast %cst_33 : f32 to vector<8x128xf32>
    %80 = arith.addf %79, %78 : vector<8x128xf32>
    %81 = arith.divf %79, %80 : vector<8x128xf32>
    %82 = vector.extract_strided_slice %65 {offsets = [0, 256], sizes = [8, 128], strides = [1, 1]} : vector<8x512xf32> to vector<8x128xf32>
    %83 = math.tanh %82 : vector<8x128xf32>
    %84 = arith.mulf %81, %50 : vector<8x128xf32>
    %85 = arith.mulf %73, %83 : vector<8x128xf32>
    %86 = arith.addf %84, %85 : vector<8x128xf32>
    %87 = vector.extract_strided_slice %65 {offsets = [0, 384], sizes = [8, 128], strides = [1, 1]} : vector<8x512xf32> to vector<8x128xf32>
    %88 = arith.mulf %22, %86 : vector<8x128xf32>
    %89 = arith.addf %87, %88 : vector<8x128xf32>
    %90 = arith.negf %89 : vector<8x128xf32>
    %91 = math.exp %90 : vector<8x128xf32>
    %cst_34 = arith.constant 1.000000e+00 : f32
    %92 = vector.broadcast %cst_34 : f32 to vector<8x128xf32>
    %93 = arith.addf %92, %91 : vector<8x128xf32>
    %94 = arith.divf %92, %93 : vector<8x128xf32>
    %95 = math.tanh %86 : vector<8x128xf32>
    %96 = arith.mulf %94, %95 : vector<8x128xf32>
    %c2_i32 = arith.constant 2 : i32
    %97 = arith.index_cast %c2_i32 : i32 to index
    %c0_35 = arith.constant 0 : index
    %c0_36 = arith.constant 0 : index
    %98 = vector.load %arg14[%97, %c0_35, %c0_36] : memref<8x8x512xf32, #tpu.memory_space<vmem>>, vector<1x8x512xf32>
    %99 = vector.shape_cast %98 : vector<1x8x512xf32> to vector<8x512xf32>
    %cst_37 = arith.constant dense<0.000000e+00> : vector<8x512xf32>
    %100 = tpu.matmul %96, %3, %cst_37 {dimension_numbers = #tpu.dot_dimension_numbers<[1], [0], [0], [1], [0, 0, 1, 1], [], []>} : vector<8x128xf32>, vector<128x512xf32>, vector<8x512xf32> -> vector<8x512xf32>
    %101 = arith.addf %99, %100 : vector<8x512xf32>
    %102 = vector.extract_strided_slice %101 {offsets = [0, 0], sizes = [8, 128], strides = [1, 1]} : vector<8x512xf32> to vector<8x128xf32>
    %103 = arith.mulf %16, %86 : vector<8x128xf32>
    %104 = arith.addf %102, %103 : vector<8x128xf32>
    %105 = arith.negf %104 : vector<8x128xf32>
    %106 = math.exp %105 : vector<8x128xf32>
    %cst_38 = arith.constant 1.000000e+00 : f32
    %107 = vector.broadcast %cst_38 : f32 to vector<8x128xf32>
    %108 = arith.addf %107, %106 : vector<8x128xf32>
    %109 = arith.divf %107, %108 : vector<8x128xf32>
    %110 = vector.extract_strided_slice %101 {offsets = [0, 128], sizes = [8, 128], strides = [1, 1]} : vector<8x512xf32> to vector<8x128xf32>
    %111 = arith.mulf %19, %86 : vector<8x128xf32>
    %112 = arith.addf %110, %111 : vector<8x128xf32>
    %113 = arith.negf %112 : vector<8x128xf32>
    %114 = math.exp %113 : vector<8x128xf32>
    %cst_39 = arith.constant 1.000000e+00 : f32
    %115 = vector.broadcast %cst_39 : f32 to vector<8x128xf32>
    %116 = arith.addf %115, %114 : vector<8x128xf32>
    %117 = arith.divf %115, %116 : vector<8x128xf32>
    %118 = vector.extract_strided_slice %101 {offsets = [0, 256], sizes = [8, 128], strides = [1, 1]} : vector<8x512xf32> to vector<8x128xf32>
    %119 = math.tanh %118 : vector<8x128xf32>
    %120 = arith.mulf %117, %86 : vector<8x128xf32>
    %121 = arith.mulf %109, %119 : vector<8x128xf32>
    %122 = arith.addf %120, %121 : vector<8x128xf32>
    %123 = vector.extract_strided_slice %101 {offsets = [0, 384], sizes = [8, 128], strides = [1, 1]} : vector<8x512xf32> to vector<8x128xf32>
    %124 = arith.mulf %22, %122 : vector<8x128xf32>
    %125 = arith.addf %123, %124 : vector<8x128xf32>
    %126 = arith.negf %125 : vector<8x128xf32>
    %127 = math.exp %126 : vector<8x128xf32>
    %cst_40 = arith.constant 1.000000e+00 : f32
    %128 = vector.broadcast %cst_40 : f32 to vector<8x128xf32>
    %129 = arith.addf %128, %127 : vector<8x128xf32>
    %130 = arith.divf %128, %129 : vector<8x128xf32>
    %131 = math.tanh %122 : vector<8x128xf32>
    %132 = arith.mulf %130, %131 : vector<8x128xf32>
    %c3_i32 = arith.constant 3 : i32
    %133 = arith.index_cast %c3_i32 : i32 to index
    %c0_41 = arith.constant 0 : index
    %c0_42 = arith.constant 0 : index
    %134 = vector.load %arg14[%133, %c0_41, %c0_42] : memref<8x8x512xf32, #tpu.memory_space<vmem>>, vector<1x8x512xf32>
    %135 = vector.shape_cast %134 : vector<1x8x512xf32> to vector<8x512xf32>
    %cst_43 = arith.constant dense<0.000000e+00> : vector<8x512xf32>
    %136 = tpu.matmul %132, %3, %cst_43 {dimension_numbers = #tpu.dot_dimension_numbers<[1], [0], [0], [1], [0, 0, 1, 1], [], []>} : vector<8x128xf32>, vector<128x512xf32>, vector<8x512xf32> -> vector<8x512xf32>
    %137 = arith.addf %135, %136 : vector<8x512xf32>
    %138 = vector.extract_strided_slice %137 {offsets = [0, 0], sizes = [8, 128], strides = [1, 1]} : vector<8x512xf32> to vector<8x128xf32>
    %139 = arith.mulf %16, %122 : vector<8x128xf32>
    %140 = arith.addf %138, %139 : vector<8x128xf32>
    %141 = arith.negf %140 : vector<8x128xf32>
    %142 = math.exp %141 : vector<8x128xf32>
    %cst_44 = arith.constant 1.000000e+00 : f32
    %143 = vector.broadcast %cst_44 : f32 to vector<8x128xf32>
    %144 = arith.addf %143, %142 : vector<8x128xf32>
    %145 = arith.divf %143, %144 : vector<8x128xf32>
    %146 = vector.extract_strided_slice %137 {offsets = [0, 128], sizes = [8, 128], strides = [1, 1]} : vector<8x512xf32> to vector<8x128xf32>
    %147 = arith.mulf %19, %122 : vector<8x128xf32>
    %148 = arith.addf %146, %147 : vector<8x128xf32>
    %149 = arith.negf %148 : vector<8x128xf32>
    %150 = math.exp %149 : vector<8x128xf32>
    %cst_45 = arith.constant 1.000000e+00 : f32
    %151 = vector.broadcast %cst_45 : f32 to vector<8x128xf32>
    %152 = arith.addf %151, %150 : vector<8x128xf32>
    %153 = arith.divf %151, %152 : vector<8x128xf32>
    %154 = vector.extract_strided_slice %137 {offsets = [0, 256], sizes = [8, 128], strides = [1, 1]} : vector<8x512xf32> to vector<8x128xf32>
    %155 = math.tanh %154 : vector<8x128xf32>
    %156 = arith.mulf %153, %122 : vector<8x128xf32>
    %157 = arith.mulf %145, %155 : vector<8x128xf32>
    %158 = arith.addf %156, %157 : vector<8x128xf32>
    %159 = vector.extract_strided_slice %137 {offsets = [0, 384], sizes = [8, 128], strides = [1, 1]} : vector<8x512xf32> to vector<8x128xf32>
    %160 = arith.mulf %22, %158 : vector<8x128xf32>
    %161 = arith.addf %159, %160 : vector<8x128xf32>
    %162 = arith.negf %161 : vector<8x128xf32>
    %163 = math.exp %162 : vector<8x128xf32>
    %cst_46 = arith.constant 1.000000e+00 : f32
    %164 = vector.broadcast %cst_46 : f32 to vector<8x128xf32>
    %165 = arith.addf %164, %163 : vector<8x128xf32>
    %166 = arith.divf %164, %165 : vector<8x128xf32>
    %167 = math.tanh %158 : vector<8x128xf32>
    %168 = arith.mulf %166, %167 : vector<8x128xf32>
    %c4_i32 = arith.constant 4 : i32
    %169 = arith.index_cast %c4_i32 : i32 to index
    %c0_47 = arith.constant 0 : index
    %c0_48 = arith.constant 0 : index
    %170 = vector.load %arg14[%169, %c0_47, %c0_48] : memref<8x8x512xf32, #tpu.memory_space<vmem>>, vector<1x8x512xf32>
    %171 = vector.shape_cast %170 : vector<1x8x512xf32> to vector<8x512xf32>
    %cst_49 = arith.constant dense<0.000000e+00> : vector<8x512xf32>
    %172 = tpu.matmul %168, %3, %cst_49 {dimension_numbers = #tpu.dot_dimension_numbers<[1], [0], [0], [1], [0, 0, 1, 1], [], []>} : vector<8x128xf32>, vector<128x512xf32>, vector<8x512xf32> -> vector<8x512xf32>
    %173 = arith.addf %171, %172 : vector<8x512xf32>
    %174 = vector.extract_strided_slice %173 {offsets = [0, 0], sizes = [8, 128], strides = [1, 1]} : vector<8x512xf32> to vector<8x128xf32>
    %175 = arith.mulf %16, %158 : vector<8x128xf32>
    %176 = arith.addf %174, %175 : vector<8x128xf32>
    %177 = arith.negf %176 : vector<8x128xf32>
    %178 = math.exp %177 : vector<8x128xf32>
    %cst_50 = arith.constant 1.000000e+00 : f32
    %179 = vector.broadcast %cst_50 : f32 to vector<8x128xf32>
    %180 = arith.addf %179, %178 : vector<8x128xf32>
    %181 = arith.divf %179, %180 : vector<8x128xf32>
    %182 = vector.extract_strided_slice %173 {offsets = [0, 128], sizes = [8, 128], strides = [1, 1]} : vector<8x512xf32> to vector<8x128xf32>
    %183 = arith.mulf %19, %158 : vector<8x128xf32>
    %184 = arith.addf %182, %183 : vector<8x128xf32>
    %185 = arith.negf %184 : vector<8x128xf32>
    %186 = math.exp %185 : vector<8x128xf32>
    %cst_51 = arith.constant 1.000000e+00 : f32
    %187 = vector.broadcast %cst_51 : f32 to vector<8x128xf32>
    %188 = arith.addf %187, %186 : vector<8x128xf32>
    %189 = arith.divf %187, %188 : vector<8x128xf32>
    %190 = vector.extract_strided_slice %173 {offsets = [0, 256], sizes = [8, 128], strides = [1, 1]} : vector<8x512xf32> to vector<8x128xf32>
    %191 = math.tanh %190 : vector<8x128xf32>
    %192 = arith.mulf %189, %158 : vector<8x128xf32>
    %193 = arith.mulf %181, %191 : vector<8x128xf32>
    %194 = arith.addf %192, %193 : vector<8x128xf32>
    %195 = vector.extract_strided_slice %173 {offsets = [0, 384], sizes = [8, 128], strides = [1, 1]} : vector<8x512xf32> to vector<8x128xf32>
    %196 = arith.mulf %22, %194 : vector<8x128xf32>
    %197 = arith.addf %195, %196 : vector<8x128xf32>
    %198 = arith.negf %197 : vector<8x128xf32>
    %199 = math.exp %198 : vector<8x128xf32>
    %cst_52 = arith.constant 1.000000e+00 : f32
    %200 = vector.broadcast %cst_52 : f32 to vector<8x128xf32>
    %201 = arith.addf %200, %199 : vector<8x128xf32>
    %202 = arith.divf %200, %201 : vector<8x128xf32>
    %203 = math.tanh %194 : vector<8x128xf32>
    %204 = arith.mulf %202, %203 : vector<8x128xf32>
    %c5_i32 = arith.constant 5 : i32
    %205 = arith.index_cast %c5_i32 : i32 to index
    %c0_53 = arith.constant 0 : index
    %c0_54 = arith.constant 0 : index
    %206 = vector.load %arg14[%205, %c0_53, %c0_54] : memref<8x8x512xf32, #tpu.memory_space<vmem>>, vector<1x8x512xf32>
    %207 = vector.shape_cast %206 : vector<1x8x512xf32> to vector<8x512xf32>
    %cst_55 = arith.constant dense<0.000000e+00> : vector<8x512xf32>
    %208 = tpu.matmul %204, %3, %cst_55 {dimension_numbers = #tpu.dot_dimension_numbers<[1], [0], [0], [1], [0, 0, 1, 1], [], []>} : vector<8x128xf32>, vector<128x512xf32>, vector<8x512xf32> -> vector<8x512xf32>
    %209 = arith.addf %207, %208 : vector<8x512xf32>
    %210 = vector.extract_strided_slice %209 {offsets = [0, 0], sizes = [8, 128], strides = [1, 1]} : vector<8x512xf32> to vector<8x128xf32>
    %211 = arith.mulf %16, %194 : vector<8x128xf32>
    %212 = arith.addf %210, %211 : vector<8x128xf32>
    %213 = arith.negf %212 : vector<8x128xf32>
    %214 = math.exp %213 : vector<8x128xf32>
    %cst_56 = arith.constant 1.000000e+00 : f32
    %215 = vector.broadcast %cst_56 : f32 to vector<8x128xf32>
    %216 = arith.addf %215, %214 : vector<8x128xf32>
    %217 = arith.divf %215, %216 : vector<8x128xf32>
    %218 = vector.extract_strided_slice %209 {offsets = [0, 128], sizes = [8, 128], strides = [1, 1]} : vector<8x512xf32> to vector<8x128xf32>
    %219 = arith.mulf %19, %194 : vector<8x128xf32>
    %220 = arith.addf %218, %219 : vector<8x128xf32>
    %221 = arith.negf %220 : vector<8x128xf32>
    %222 = math.exp %221 : vector<8x128xf32>
    %cst_57 = arith.constant 1.000000e+00 : f32
    %223 = vector.broadcast %cst_57 : f32 to vector<8x128xf32>
    %224 = arith.addf %223, %222 : vector<8x128xf32>
    %225 = arith.divf %223, %224 : vector<8x128xf32>
    %226 = vector.extract_strided_slice %209 {offsets = [0, 256], sizes = [8, 128], strides = [1, 1]} : vector<8x512xf32> to vector<8x128xf32>
    %227 = math.tanh %226 : vector<8x128xf32>
    %228 = arith.mulf %225, %194 : vector<8x128xf32>
    %229 = arith.mulf %217, %227 : vector<8x128xf32>
    %230 = arith.addf %228, %229 : vector<8x128xf32>
    %231 = vector.extract_strided_slice %209 {offsets = [0, 384], sizes = [8, 128], strides = [1, 1]} : vector<8x512xf32> to vector<8x128xf32>
    %232 = arith.mulf %22, %230 : vector<8x128xf32>
    %233 = arith.addf %231, %232 : vector<8x128xf32>
    %234 = arith.negf %233 : vector<8x128xf32>
    %235 = math.exp %234 : vector<8x128xf32>
    %cst_58 = arith.constant 1.000000e+00 : f32
    %236 = vector.broadcast %cst_58 : f32 to vector<8x128xf32>
    %237 = arith.addf %236, %235 : vector<8x128xf32>
    %238 = arith.divf %236, %237 : vector<8x128xf32>
    %239 = math.tanh %230 : vector<8x128xf32>
    %240 = arith.mulf %238, %239 : vector<8x128xf32>
    %c6_i32 = arith.constant 6 : i32
    %241 = arith.index_cast %c6_i32 : i32 to index
    %c0_59 = arith.constant 0 : index
    %c0_60 = arith.constant 0 : index
    %242 = vector.load %arg14[%241, %c0_59, %c0_60] : memref<8x8x512xf32, #tpu.memory_space<vmem>>, vector<1x8x512xf32>
    %243 = vector.shape_cast %242 : vector<1x8x512xf32> to vector<8x512xf32>
    %cst_61 = arith.constant dense<0.000000e+00> : vector<8x512xf32>
    %244 = tpu.matmul %240, %3, %cst_61 {dimension_numbers = #tpu.dot_dimension_numbers<[1], [0], [0], [1], [0, 0, 1, 1], [], []>} : vector<8x128xf32>, vector<128x512xf32>, vector<8x512xf32> -> vector<8x512xf32>
    %245 = arith.addf %243, %244 : vector<8x512xf32>
    %246 = vector.extract_strided_slice %245 {offsets = [0, 0], sizes = [8, 128], strides = [1, 1]} : vector<8x512xf32> to vector<8x128xf32>
    %247 = arith.mulf %16, %230 : vector<8x128xf32>
    %248 = arith.addf %246, %247 : vector<8x128xf32>
    %249 = arith.negf %248 : vector<8x128xf32>
    %250 = math.exp %249 : vector<8x128xf32>
    %cst_62 = arith.constant 1.000000e+00 : f32
    %251 = vector.broadcast %cst_62 : f32 to vector<8x128xf32>
    %252 = arith.addf %251, %250 : vector<8x128xf32>
    %253 = arith.divf %251, %252 : vector<8x128xf32>
    %254 = vector.extract_strided_slice %245 {offsets = [0, 128], sizes = [8, 128], strides = [1, 1]} : vector<8x512xf32> to vector<8x128xf32>
    %255 = arith.mulf %19, %230 : vector<8x128xf32>
    %256 = arith.addf %254, %255 : vector<8x128xf32>
    %257 = arith.negf %256 : vector<8x128xf32>
    %258 = math.exp %257 : vector<8x128xf32>
    %cst_63 = arith.constant 1.000000e+00 : f32
    %259 = vector.broadcast %cst_63 : f32 to vector<8x128xf32>
    %260 = arith.addf %259, %258 : vector<8x128xf32>
    %261 = arith.divf %259, %260 : vector<8x128xf32>
    %262 = vector.extract_strided_slice %245 {offsets = [0, 256], sizes = [8, 128], strides = [1, 1]} : vector<8x512xf32> to vector<8x128xf32>
    %263 = math.tanh %262 : vector<8x128xf32>
    %264 = arith.mulf %261, %230 : vector<8x128xf32>
    %265 = arith.mulf %253, %263 : vector<8x128xf32>
    %266 = arith.addf %264, %265 : vector<8x128xf32>
    %267 = vector.extract_strided_slice %245 {offsets = [0, 384], sizes = [8, 128], strides = [1, 1]} : vector<8x512xf32> to vector<8x128xf32>
    %268 = arith.mulf %22, %266 : vector<8x128xf32>
    %269 = arith.addf %267, %268 : vector<8x128xf32>
    %270 = arith.negf %269 : vector<8x128xf32>
    %271 = math.exp %270 : vector<8x128xf32>
    %cst_64 = arith.constant 1.000000e+00 : f32
    %272 = vector.broadcast %cst_64 : f32 to vector<8x128xf32>
    %273 = arith.addf %272, %271 : vector<8x128xf32>
    %274 = arith.divf %272, %273 : vector<8x128xf32>
    %275 = math.tanh %266 : vector<8x128xf32>
    %276 = arith.mulf %274, %275 : vector<8x128xf32>
    %c7_i32 = arith.constant 7 : i32
    %277 = arith.index_cast %c7_i32 : i32 to index
    %c0_65 = arith.constant 0 : index
    %c0_66 = arith.constant 0 : index
    %278 = vector.load %arg14[%277, %c0_65, %c0_66] : memref<8x8x512xf32, #tpu.memory_space<vmem>>, vector<1x8x512xf32>
    %279 = vector.shape_cast %278 : vector<1x8x512xf32> to vector<8x512xf32>
    %cst_67 = arith.constant dense<0.000000e+00> : vector<8x512xf32>
    %280 = tpu.matmul %276, %3, %cst_67 {dimension_numbers = #tpu.dot_dimension_numbers<[1], [0], [0], [1], [0, 0, 1, 1], [], []>} : vector<8x128xf32>, vector<128x512xf32>, vector<8x512xf32> -> vector<8x512xf32>
    %281 = arith.addf %279, %280 : vector<8x512xf32>
    %282 = vector.extract_strided_slice %281 {offsets = [0, 0], sizes = [8, 128], strides = [1, 1]} : vector<8x512xf32> to vector<8x128xf32>
    %283 = arith.mulf %16, %266 : vector<8x128xf32>
    %284 = arith.addf %282, %283 : vector<8x128xf32>
    %285 = arith.negf %284 : vector<8x128xf32>
    %286 = math.exp %285 : vector<8x128xf32>
    %cst_68 = arith.constant 1.000000e+00 : f32
    %287 = vector.broadcast %cst_68 : f32 to vector<8x128xf32>
    %288 = arith.addf %287, %286 : vector<8x128xf32>
    %289 = arith.divf %287, %288 : vector<8x128xf32>
    %290 = vector.extract_strided_slice %281 {offsets = [0, 128], sizes = [8, 128], strides = [1, 1]} : vector<8x512xf32> to vector<8x128xf32>
    %291 = arith.mulf %19, %266 : vector<8x128xf32>
    %292 = arith.addf %290, %291 : vector<8x128xf32>
    %293 = arith.negf %292 : vector<8x128xf32>
    %294 = math.exp %293 : vector<8x128xf32>
    %cst_69 = arith.constant 1.000000e+00 : f32
    %295 = vector.broadcast %cst_69 : f32 to vector<8x128xf32>
    %296 = arith.addf %295, %294 : vector<8x128xf32>
    %297 = arith.divf %295, %296 : vector<8x128xf32>
    %298 = vector.extract_strided_slice %281 {offsets = [0, 256], sizes = [8, 128], strides = [1, 1]} : vector<8x512xf32> to vector<8x128xf32>
    %299 = math.tanh %298 : vector<8x128xf32>
    %300 = arith.mulf %297, %266 : vector<8x128xf32>
    %301 = arith.mulf %289, %299 : vector<8x128xf32>
    %302 = arith.addf %300, %301 : vector<8x128xf32>
    %303 = vector.extract_strided_slice %281 {offsets = [0, 384], sizes = [8, 128], strides = [1, 1]} : vector<8x512xf32> to vector<8x128xf32>
    %304 = arith.mulf %22, %302 : vector<8x128xf32>
    %305 = arith.addf %303, %304 : vector<8x128xf32>
    %306 = arith.negf %305 : vector<8x128xf32>
    %307 = math.exp %306 : vector<8x128xf32>
    %cst_70 = arith.constant 1.000000e+00 : f32
    %308 = vector.broadcast %cst_70 : f32 to vector<8x128xf32>
    %309 = arith.addf %308, %307 : vector<8x128xf32>
    %310 = arith.divf %308, %309 : vector<8x128xf32>
    %311 = math.tanh %302 : vector<8x128xf32>
    %312 = arith.mulf %310, %311 : vector<8x128xf32>
    %c8_i32 = arith.constant 8 : i32
    %c0_71 = arith.constant 0 : index
    %c0_72 = arith.constant 0 : index
    %313 = vector.load %arg12[%c0_71, %c0_72] : memref<8x128xf32, #tpu.memory_space<vmem>>, vector<8x128xf32>
    tpu.vector_store %arg12[%c0_71, %c0_72], %312 {strides = array<i32>} : memref<8x128xf32, #tpu.memory_space<vmem>>, vector<8x128xf32>,
    %c0_73 = arith.constant 0 : index
    %c0_74 = arith.constant 0 : index
    %314 = vector.load %arg13[%c0_73, %c0_74] : memref<8x128xf32, #tpu.memory_space<vmem>>, vector<8x128xf32>
    tpu.vector_store %arg13[%c0_73, %c0_74], %302 {strides = array<i32>} : memref<8x128xf32, #tpu.memory_space<vmem>>, vector<8x128xf32>,
    %c0_i32_75 = arith.constant 0 : i32
    %315 = arith.cmpi eq, %arg1, %c0_i32_75 : i32
    %316 = arith.extui %315 : i1 to i32
    %c0_i32_76 = arith.constant 0 : i32
    %317 = arith.cmpi ne, %316, %c0_i32_76 : i32
    scf.if %317 {
      %c0_77 = arith.constant 0 : index
      %c0_78 = arith.constant 0 : index
      %318 = vector.load %arg10[%c0_77, %c0_78] : memref<8x128xf32, #tpu.memory_space<vmem>>, vector<8x128xf32>
      tpu.vector_store %arg10[%c0_77, %c0_78], %312 {strides = array<i32>} : memref<8x128xf32, #tpu.memory_space<vmem>>, vector<8x128xf32>,
      %c0_79 = arith.constant 0 : index
      %c0_80 = arith.constant 0 : index
      %319 = vector.load %arg11[%c0_79, %c0_80] : memref<8x128xf32, #tpu.memory_space<vmem>>, vector<8x128xf32>
      tpu.vector_store %arg11[%c0_79, %c0_80], %302 {strides = array<i32>} : memref<8x128xf32, #tpu.memory_space<vmem>>, vector<8x128xf32>,
    } else {
    }
    return
  }
  func.func @transform_0(%arg0: i32, %arg1: i32) -> (i32, i32, i32) {
    %c0_i32 = arith.constant 0 : i32
    %c0_i32_0 = arith.constant 0 : i32
    return %arg1, %arg0, %c0_i32 : i32, i32, i32
  }
  func.func @transform_1(%arg0: i32, %arg1: i32) -> (i32, i32) {
    %c0_i32 = arith.constant 0 : i32
    %c0_i32_0 = arith.constant 0 : i32
    return %arg0, %c0_i32 : i32, i32
  }
  func.func @transform_2(%arg0: i32, %arg1: i32) -> (i32, i32) {
    %c0_i32 = arith.constant 0 : i32
    %c0_i32_0 = arith.constant 0 : i32
    %c0_i32_1 = arith.constant 0 : i32
    return %c0_i32, %c0_i32_0 : i32, i32
  }
  func.func @transform_3(%arg0: i32, %arg1: i32) -> (i32, i32) {
    %c0_i32 = arith.constant 0 : i32
    %c0_i32_0 = arith.constant 0 : i32
    %c0_i32_1 = arith.constant 0 : i32
    return %c0_i32, %c0_i32_0 : i32, i32
  }
  func.func @transform_4(%arg0: i32, %arg1: i32) -> (i32, i32) {
    %c0_i32 = arith.constant 0 : i32
    %c0_i32_0 = arith.constant 0 : i32
    %c0_i32_1 = arith.constant 0 : i32
    return %c0_i32, %c0_i32_0 : i32, i32
  }
  func.func @transform_5(%arg0: i32, %arg1: i32) -> (i32, i32) {
    %c0_i32 = arith.constant 0 : i32
    %c0_i32_0 = arith.constant 0 : i32
    %c0_i32_1 = arith.constant 0 : i32
    return %c0_i32, %c0_i32_0 : i32, i32
  }
  func.func @transform_6(%arg0: i32, %arg1: i32) -> (i32, i32) {
    %c0_i32 = arith.constant 0 : i32
    %c0_i32_0 = arith.constant 0 : i32
    %c0_i32_1 = arith.constant 0 : i32
    return %c0_i32, %c0_i32_0 : i32, i32
  }
  func.func @transform_7(%arg0: i32, %arg1: i32) -> (i32, i32) {
    %c0_i32 = arith.constant 0 : i32
    %c0_i32_0 = arith.constant 0 : i32
    %c0_i32_1 = arith.constant 0 : i32
    return %c0_i32, %c0_i32_0 : i32, i32
  }
  func.func @transform_8(%arg0: i32, %arg1: i32) -> (i32, i32) {
    %c0_i32 = arith.constant 0 : i32
    %c0_i32_0 = arith.constant 0 : i32
    return %arg0, %c0_i32 : i32, i32
  }
  func.func @transform_9(%arg0: i32, %arg1: i32) -> (i32, i32) {
    %c0_i32 = arith.constant 0 : i32
    %c0_i32_0 = arith.constant 0 : i32
    return %arg0, %c0_i32 : i32, i32
  }
}

</mosaic_0001>

<bundles_post_ra>
// kernel: time_lstm_forward.1
= control target key start
LH: loop header
LB: loop body
LE: loop exit
PB: predicated region body
PF: predicated region fallthrough
CT: control target
= control target key end

     0   :  { %v2767_v3 = vmov 0.0   ;;  %s3713_s3 = inlined_call_operand.vmem [shape: f32[128,512], index: 3, kind: input, shape index: {}]   ;;  %s3714_s2 = inlined_call_operand.vmem [shape: f32[128,512], index: 2, kind: input, shape index: {}]   ;;  %s3715_s0 = inlined_call_operand.vmem [shape: f32[8,8,128], index: 0, kind: input, shape index: {}]   ;;  %s3716_s4 = inlined_call_operand.vmem [shape: f32[1,512], index: 4, kind: input, shape index: {}]   ;;  %s3717_s1 = inlined_call_operand.vmem [shape: f32[8,128], index: 1, kind: input, shape index: {}]   ;;  %s3718_s5 = inlined_call_operand.vmem [shape: f32[1,128], index: 5, kind: input, shape index: {}]   ;;  %s3719_s6 = inlined_call_operand.vmem [shape: f32[1,128], index: 6, kind: input, shape index: {}]   ;;  %s3720_s7 = inlined_call_operand.vmem [shape: f32[1,128], index: 7, kind: input, shape index: {}]   ;;  %s3721_s9 = inlined_call_operand.vmem [shape: f32[8,128], index: 9, kind: output, shape index: {1}]   ;;  %s3722_s8 = inlined_call_operand.vmem [shape: f32[8,128], index: 8, kind: output, shape index: {0}]  }
   0x1   :  { %v111_v0 = vld [vmem:[%s3713_s3 + $0x8] sm:$0xff]  ;;  %v113_v2 = vld [vmem:[%s3713_s3 + $0x18] sm:$0xff]  ;;  %238 = vmatprep.mubr.f32.mxu0 %v2767_v3  ;;  %351 = vmatprep.mubr.f32.mxu1 %v2767_v3  ;;  %v110_v6 = vld [vmem:[%s3713_s3] sm:$0xff] }
   0x2   :  { %v115_v1 = vld [vmem:[%s3713_s3 + $0x28] sm:$0xff]  ;;  %v117_v5 = vld [vmem:[%s3713_s3 + $0x38] sm:$0xff]  ;;  %v114_v7 = vld [vmem:[%s3713_s3 + $0x20] sm:$0xff] }
   0x3   :  { %v1998_v4 = vpack.c.bf16 %v115_v1, %v111_v0  ;;  %v2030_v8 = vpack.c.bf16 %v117_v5, %v113_v2  ;;  %v2000_v9 = vpack.c.bf16 %v114_v7, %v110_v6  ;;  %v112_v10 = vld [vmem:[%s3713_s3 + $0x10] sm:$0xff]  ;;  %v119_v12 = vld [vmem:[%s3713_s3 + $0x48] sm:$0xff]  ;;  %v121_v15 = vld [vmem:[%s3713_s3 + $0x58] sm:$0xff] }
   0x4   :  { %v116_v11 = vld [vmem:[%s3713_s3 + $0x30] sm:$0xff]  ;;  %v123_v14 = vld [vmem:[%s3713_s3 + $0x68] sm:$0xff]  ;;  %v125_v16 = vld [vmem:[%s3713_s3 + $0x78] sm:$0xff] }
   0x5   :  { %1999 = vmatprep.subr.bf16.mxu0 %v1998_v4  ;;  %v2032_v13 = vpack.c.bf16 %v116_v11, %v112_v10  ;;  %2031 = vmatprep.subr.bf16.mxu1 %v2030_v8  ;;  %v2002_v17 = vpack.c.bf16 %v123_v14, %v119_v12  ;;  %v2034_v18 = vpack.c.bf16 %v125_v16, %v121_v15  ;;  %v118_v19 = vld [vmem:[%s3713_s3 + $0x40] sm:$0xff]  ;;  %v120_v21 = vld [vmem:[%s3713_s3 + $0x50] sm:$0xff]  ;;  %v127_v24 = vld [vmem:[%s3713_s3 + $0x88] sm:$0xff] }
   0x6   :  { %2001 = vmatpush1.bf16.msra.mxu0 %v2000_v9  ;;  %v122_v20 = vld [vmem:[%s3713_s3 + $0x60] sm:$0xff]  ;;  %v124_v23 = vld [vmem:[%s3713_s3 + $0x70] sm:$0xff]  ;;  %v131_v25 = vld [vmem:[%s3713_s3 + $0xa8] sm:$0xff] }
   0x7   :  { %2033 = vmatpush1.bf16.msra.mxu1 %v2032_v13  ;;  %v2004_v22 = vpack.c.bf16 %v122_v20, %v118_v19  ;;  %2003 = vmatprep.subr.bf16.mxu0 %v2002_v17  ;;  %v2036_v26 = vpack.c.bf16 %v124_v23, %v120_v21  ;;  %v2006_v27 = vpack.c.bf16 %v131_v25, %v127_v24  ;;  %v129_v28 = vld [vmem:[%s3713_s3 + $0x98] sm:$0xff]  ;;  %v126_v30 = vld [vmem:[%s3713_s3 + $0x80] sm:$0xff]  ;;  %v128_v33 = vld [vmem:[%s3713_s3 + $0x90] sm:$0xff] }
   0x8   :  { %2035 = vmatprep.subr.bf16.mxu1 %v2034_v18  ;;  %v133_v29 = vld [vmem:[%s3713_s3 + $0xb8] sm:$0xff]  ;;  %v130_v32 = vld [vmem:[%s3713_s3 + $0xa0] sm:$0xff]  ;;  %v132_v34 = vld [vmem:[%s3713_s3 + $0xb0] sm:$0xff] }
   0x9   :  { %v2038_v31 = vpack.c.bf16 %v133_v29, %v129_v28  ;;  %v2008_v35 = vpack.c.bf16 %v130_v32, %v126_v30  ;;  %v135_v36 = vld [vmem:[%s3713_s3 + $0xc8] sm:$0xff]  ;;  %v137_v38 = vld [vmem:[%s3713_s3 + $0xd8] sm:$0xff]  ;;  %v2040_v39 = vpack.c.bf16 %v132_v34, %v128_v33  ;;  %v134_v42 = vld [vmem:[%s3713_s3 + $0xc0] sm:$0xff] }
   0xa   :  { %2005 = vmatpush1.bf16.msra.mxu0 %v2004_v22  ;;  %v139_v37 = vld [vmem:[%s3713_s3 + $0xe8] sm:$0xff]  ;;  %v141_v41 = vld [vmem:[%s3713_s3 + $0xf8] sm:$0xff]  ;;  %v138_v43 = vld [vmem:[%s3713_s3 + $0xe0] sm:$0xff] }
   0xb   :  { %2037 = vmatpush1.bf16.msra.mxu1 %v2036_v26  ;;  %2007 = vmatprep.subr.bf16.mxu0 %v2006_v27  ;;  %v2010_v40 = vpack.c.bf16 %v139_v37, %v135_v36  ;;  %v2042_v44 = vpack.c.bf16 %v141_v41, %v137_v38  ;;  %v136_v45 = vld [vmem:[%s3713_s3 + $0xd0] sm:$0xff]  ;;  %v143_v47 = vld [vmem:[%s3713_s3 + $0x108] sm:$0xff]  ;;  %v145_v49 = vld [vmem:[%s3713_s3 + $0x118] sm:$0xff]  ;;  %v2012_v51 = vpack.c.bf16 %v138_v43, %v134_v42 }
   0xc   :  { %2039 = vmatprep.subr.bf16.mxu1 %v2038_v31  ;;  %v140_v46 = vld [vmem:[%s3713_s3 + $0xf0] sm:$0xff]  ;;  %v147_v48 = vld [vmem:[%s3713_s3 + $0x128] sm:$0xff]  ;;  %v149_v50 = vld [vmem:[%s3713_s3 + $0x138] sm:$0xff] }
   0xd   :  { %v2044_v52 = vpack.c.bf16 %v140_v46, %v136_v45  ;;  %v2014_v53 = vpack.c.bf16 %v147_v48, %v143_v47  ;;  %v142_v54 = vld [vmem:[%s3713_s3 + $0x100] sm:$0xff]  ;;  %v144_v56 = vld [vmem:[%s3713_s3 + $0x110] sm:$0xff]  ;;  %v2046_v57 = vpack.c.bf16 %v149_v50, %v145_v49  ;;  %v151_v59 = vld [vmem:[%s3713_s3 + $0x148] sm:$0xff] }
   0xe   :  { %2009 = vmatpush1.bf16.msra.mxu0 %v2008_v35  ;;  %v146_v55 = vld [vmem:[%s3713_s3 + $0x120] sm:$0xff]  ;;  %v148_v58 = vld [vmem:[%s3713_s3 + $0x130] sm:$0xff]  ;;  %v155_v60 = vld [vmem:[%s3713_s3 + $0x168] sm:$0xff] }
   0xf   :  { %2041 = vmatpush1.bf16.msra.mxu1 %v2040_v39  ;;  %2011 = vmatprep.subr.bf16.mxu0 %v2010_v40  ;;  %v153_v61 = vld [vmem:[%s3713_s3 + $0x158] sm:$0xff]  ;;  %v2016_v63 = vpack.c.bf16 %v146_v55, %v142_v54  ;;  %v2048_v0 = vpack.c.bf16 %v148_v58, %v144_v56  ;;  %v2018_v1 = vpack.c.bf16 %v155_v60, %v151_v59  ;;  %v150_v2 = vld [vmem:[%s3713_s3 + $0x140] sm:$0xff]  ;;  %v152_v5 = vld [vmem:[%s3713_s3 + $0x150] sm:$0xff] }
  0x10   :  { %2043 = vmatprep.subr.bf16.mxu1 %v2042_v44  ;;  %v157_v62 = vld [vmem:[%s3713_s3 + $0x178] sm:$0xff]  ;;  %v154_v4 = vld [vmem:[%s3713_s3 + $0x160] sm:$0xff]  ;;  %v156_v7 = vld [vmem:[%s3713_s3 + $0x170] sm:$0xff] }
  0x11   :  { %v2050_v6 = vpack.c.bf16 %v157_v62, %v153_v61  ;;  %v159_v8 = vld [vmem:[%s3713_s3 + $0x188] sm:$0xff]  ;;  %v161_v10 = vld [vmem:[%s3713_s3 + $0x198] sm:$0xff]  ;;  %v2020_v12 = vpack.c.bf16 %v154_v4, %v150_v2  ;;  %v2052_v13 = vpack.c.bf16 %v156_v7, %v152_v5  ;;  %v158_v15 = vld [vmem:[%s3713_s3 + $0x180] sm:$0xff] }
  0x12   :  { %2013 = vmatpush1.bf16.msra.mxu0 %v2012_v51  ;;  %v163_v9 = vld [vmem:[%s3713_s3 + $0x1a8] sm:$0xff]  ;;  %v165_v11 = vld [vmem:[%s3713_s3 + $0x1b8] sm:$0xff]  ;;  %v162_v16 = vld [vmem:[%s3713_s3 + $0x1a0] sm:$0xff] }
  0x13   :  { %2045 = vmatpush1.bf16.msra.mxu1 %v2044_v52  ;;  %2015 = vmatprep.subr.bf16.mxu0 %v2014_v53  ;;  %v2022_v14 = vpack.c.bf16 %v163_v9, %v159_v8  ;;  %v160_v17 = vld [vmem:[%s3713_s3 + $0x190] sm:$0xff]  ;;  %v2054_v18 = vpack.c.bf16 %v165_v11, %v161_v10  ;;  %v167_v20 = vld [vmem:[%s3713_s3 + $0x1c8] sm:$0xff]  ;;  %v169_v22 = vld [vmem:[%s3713_s3 + $0x1d8] sm:$0xff]  ;;  %v2024_v24 = vpack.c.bf16 %v162_v16, %v158_v15 }
  0x14   :  { %2047 = vmatprep.subr.bf16.mxu1 %v2046_v57  ;;  %v164_v19 = vld [vmem:[%s3713_s3 + $0x1b0] sm:$0xff]  ;;  %v171_v21 = vld [vmem:[%s3713_s3 + $0x1e8] sm:$0xff]  ;;  %v173_v23 = vld [vmem:[%s3713_s3 + $0x1f8] sm:$0xff] }
  0x15   :  { %v2056_v25 = vpack.c.bf16 %v164_v19, %v160_v17  ;;  %v2026_v26 = vpack.c.bf16 %v171_v21, %v167_v20  ;;  %v166_v27 = vld [vmem:[%s3713_s3 + $0x1c0] sm:$0xff]  ;;  %v168_v29 = vld [vmem:[%s3713_s3 + $0x1d0] sm:$0xff]  ;;  %v2058_v30 = vpack.c.bf16 %v173_v23, %v169_v22  ;;  %v39_v32 = vld [vmem:[%s3714_s2 + $0x8] sm:$0xff] }
  0x16   :  { %2017 = vmatpush1.bf16.msra.mxu0 %v2016_v63  ;;  %v170_v28 = vld [vmem:[%s3713_s3 + $0x1e0] sm:$0xff]  ;;  %v172_v31 = vld [vmem:[%s3713_s3 + $0x1f0] sm:$0xff]  ;;  %v43_v33 = vld [vmem:[%s3714_s2 + $0x28] sm:$0xff] }
  0x17   :  { %2049 = vmatpush1.bf16.msra.mxu1 %v2048_v0  ;;  %2019 = vmatprep.subr.bf16.mxu0 %v2018_v1  ;;  %v41_v34 = vld [vmem:[%s3714_s2 + $0x18] sm:$0xff]  ;;  %v2028_v36 = vpack.c.bf16 %v170_v28, %v166_v27  ;;  %v2060_v37 = vpack.c.bf16 %v172_v31, %v168_v29  ;;  %v3024_v38 = vpack.c.bf16 %v43_v33, %v39_v32  ;;  %v38_v39 = vld [vmem:[%s3714_s2] sm:$0xff]  ;;  %v40_v42 = vld [vmem:[%s3714_s2 + $0x10] sm:$0xff] }
  0x18   :  { %2051 = vmatprep.subr.bf16.mxu1 %v2050_v6  ;;  %v45_v35 = vld [vmem:[%s3714_s2 + $0x38] sm:$0xff]  ;;  %v42_v40 = vld [vmem:[%s3714_s2 + $0x20] sm:$0xff]  ;;  %v44_v43 = vld [vmem:[%s3714_s2 + $0x30] sm:$0xff] }
  0x19   :  { %v3032_v41 = vpack.c.bf16 %v45_v35, %v41_v34  ;;  %v47_v44 = vld [vmem:[%s3714_s2 + $0x48] sm:$0xff]  ;;  %v102_v46 = vld [vmem:[%s3715_s0] sm:$0xff]  ;;  %v3049_v47 = vpack.c.bf16 %v42_v40, %v38_v39  ;;  %v49_v48 = vld [vmem:[%s3714_s2 + $0x58] sm:$0xff]  ;;  %v3058_v50 = vpack.c.bf16 %v44_v43, %v40_v42 }
  0x1a   :  { %2021 = vmatpush1.bf16.msra.mxu0 %v2020_v12  ;;  %v51_v45 = vld [vmem:[%s3714_s2 + $0x68] sm:$0xff]  ;;  %v53_v49 = vld [vmem:[%s3714_s2 + $0x78] sm:$0xff]  ;;  %v46_v51 = vld [vmem:[%s3714_s2 + $0x40] sm:$0xff] }
  0x1b   :  { %2053 = vmatpush1.bf16.msra.mxu1 %v2052_v13  ;;  %2023 = vmatprep.subr.bf16.mxu0 %v2022_v14  ;;  %v50_v52 = vld [vmem:[%s3714_s2 + $0x60] sm:$0xff]  ;;  %v3067_v53 = vpack.c.bf16 %v51_v45, %v47_v44  ;;  %v48_v54 = vld [vmem:[%s3714_s2 + $0x50] sm:$0xff]  ;;  %v3075_v56 = vpack.c.bf16 %v53_v49, %v49_v48  ;;  %v55_v57 = vld [vmem:[%s3714_s2 + $0x88] sm:$0xff] }
  0x1c   :  { %2055 = vmatprep.subr.bf16.mxu1 %v2054_v18  ;;  %v52_v55 = vld [vmem:[%s3714_s2 + $0x70] sm:$0xff]  ;;  %v59_v58 = vld [vmem:[%s3714_s2 + $0xa8] sm:$0xff]  ;;  %v3087_v60 = vpack.c.bf16 %v50_v52, %v46_v51  ;;  %v57_v61 = vld [vmem:[%s3714_s2 + $0x98] sm:$0xff] }
  0x1d   :  { %v103_v59 = vld [vmem:[%s3715_s0 + $0x8] sm:$0xff]  ;;  %v61_v62 = vld [vmem:[%s3714_s2 + $0xb8] sm:$0xff]  ;;  %v3097_v63 = vpack.c.bf16 %v52_v55, %v48_v54  ;;  %v54_v0 = vld [vmem:[%s3714_s2 + $0x80] sm:$0xff]  ;;  %v3107_v2 = vpack.c.bf16 %v59_v58, %v55_v57 }
  0x1e   :  { %2025 = vmatpush1.bf16.msra.mxu0 %v2024_v24  ;;  %v58_v1 = vld [vmem:[%s3714_s2 + $0xa0] sm:$0xff]  ;;  %v56_v4 = vld [vmem:[%s3714_s2 + $0x90] sm:$0xff]  ;;  %v3116_v6 = vpack.c.bf16 %v61_v62, %v57_v61  ;;  %v63_v7 = vld [vmem:[%s3714_s2 + $0xc8] sm:$0xff] }
  0x1f   :  { %2057 = vmatpush1.bf16.msra.mxu1 %v2056_v25  ;;  %2027 = vmatprep.subr.bf16.mxu0 %v2026_v26  ;;  %v60_v5 = vld [vmem:[%s3714_s2 + $0xb0] sm:$0xff]  ;;  %v67_v8 = vld [vmem:[%s3714_s2 + $0xe8] sm:$0xff]  ;;  %v3128_v10 = vpack.c.bf16 %v58_v1, %v54_v0  ;;  %v65_v11 = vld [vmem:[%s3714_s2 + $0xd8] sm:$0xff] }
  0x20   :  { %2059 = vmatprep.subr.bf16.mxu1 %v2058_v30  ;;  %v104_v9 = vld [vmem:[%s3715_s0 + $0x10] sm:$0xff]  ;;  %v69_v12 = vld [vmem:[%s3714_s2 + $0xf8] sm:$0xff]  ;;  %v3138_v13 = vpack.c.bf16 %v60_v5, %v56_v4  ;;  %v62_v14 = vld [vmem:[%s3714_s2 + $0xc0] sm:$0xff]  ;;  %v3148_v16 = vpack.c.bf16 %v67_v8, %v63_v7 }
  0x21   :  { %v66_v15 = vld [vmem:[%s3714_s2 + $0xe0] sm:$0xff]  ;;  %v64_v17 = vld [vmem:[%s3714_s2 + $0xd0] sm:$0xff]  ;;  %v3157_v19 = vpack.c.bf16 %v69_v12, %v65_v11  ;;  %v71_v20 = vld [vmem:[%s3714_s2 + $0x108] sm:$0xff] }
  0x22   :  { %2029 = vmatpush1.bf16.msra.mxu0 %v2028_v36  ;;  %v68_v18 = vld [vmem:[%s3714_s2 + $0xf0] sm:$0xff]  ;;  %v75_v21 = vld [vmem:[%s3714_s2 + $0x128] sm:$0xff]  ;;  %v105_v22 = vld [vmem:[%s3715_s0 + $0x18] sm:$0xff]  ;;  %v3169_v23 = vpack.c.bf16 %v66_v15, %v62_v14 }
  0x23   :  { %2061 = vmatpush1.bf16.msra.mxu1 %v2060_v37  ;;  %2063 = vmatprep.subr.bf16.mxu0 %v3024_v38  ;;  %v73_v24 = vld [vmem:[%s3714_s2 + $0x118] sm:$0xff]  ;;  %v3179_v26 = vpack.c.bf16 %v68_v18, %v64_v17  ;;  %v70_v27 = vld [vmem:[%s3714_s2 + $0x100] sm:$0xff]  ;;  %v3189_v29 = vpack.c.bf16 %v75_v21, %v71_v20  ;;  %v72_v30 = vld [vmem:[%s3714_s2 + $0x110] sm:$0xff] }
  0x24   :  { %2095 = vmatprep.subr.bf16.mxu1 %v3032_v41  ;;  %v77_v25 = vld [vmem:[%s3714_s2 + $0x138] sm:$0xff]  ;;  %v74_v28 = vld [vmem:[%s3714_s2 + $0x120] sm:$0xff]  ;;  %v76_v31 = vld [vmem:[%s3714_s2 + $0x130] sm:$0xff] }
  0x25   :  { %239 = vmatmul.mubr.f32.vlgmr.msra.gmra.mrb[0].mxu0 %v102_v46  ;;  %v3198_v32 = vpack.c.bf16 %v77_v25, %v73_v24  ;;  %v79_v33 = vld [vmem:[%s3714_s2 + $0x148] sm:$0xff]  ;;  %v106_v35 = vld [vmem:[%s3715_s0 + $0x20] sm:$0xff]  ;;  %v3210_v36 = vpack.c.bf16 %v74_v28, %v70_v27  ;;  %v81_v37 = vld [vmem:[%s3714_s2 + $0x158] sm:$0xff]  ;;  %v3220_v40 = vpack.c.bf16 %v76_v31, %v72_v30  ;;  %v402_v28 = vlaneseq }
  0x26   :  { %352 = vmatmul.mubr.f32.vlgmr.msra.gmra.mrb[0].mxu1 %v102_v46  ;;  %2065 = vmatpush1.bf16.msra.mxu0 %v3049_v47  ;;  %v83_v34 = vld [vmem:[%s3714_s2 + $0x168] sm:$0xff]  ;;  %v85_v39 = vld [vmem:[%s3714_s2 + $0x178] sm:$0xff]  ;;  %v78_v42 = vld [vmem:[%s3714_s2 + $0x140] sm:$0xff] }
  0x27   :  { %2097 = vmatpush1.bf16.msra.mxu1 %v3058_v50  ;;  %244 = vmatprep.mubr.f32.mxu0 %v2767_v3  ;;  %v82_v43 = vld [vmem:[%s3714_s2 + $0x160] sm:$0xff]  ;;  %v3230_v44 = vpack.c.bf16 %v83_v34, %v79_v33  ;;  %v80_v45 = vld [vmem:[%s3714_s2 + $0x150] sm:$0xff]  ;;  %v3239_v48 = vpack.c.bf16 %v85_v39, %v81_v37  ;;  %v87_v49 = vld [vmem:[%s3714_s2 + $0x188] sm:$0xff]  ;;  %v403_v30 = vshrl.u32 %v402_v28, 7 }
  0x28   :  { %357 = vmatprep.mubr.f32.mxu1 %v2767_v3  ;;  %2067 = vmatprep.subr.bf16.mxu0 %v3067_v53  ;;  %v84_v46 = vld [vmem:[%s3714_s2 + $0x170] sm:$0xff]  ;;  %v91_v51 = vld [vmem:[%s3714_s2 + $0x1a8] sm:$0xff]  ;;  %v3251_v54 = vpack.c.bf16 %v82_v43, %v78_v42  ;;  %v89_v55 = vld [vmem:[%s3714_s2 + $0x198] sm:$0xff] }
  0x29   :  { %245 = vmatmul.mubr.f32.gmra.mrb[2].mxu0 %v103_v59  ;;  %2099 = vmatprep.subr.bf16.mxu1 %v3075_v56  ;;  %v107_v52 = vld [vmem:[%s3715_s0 + $0x28] sm:$0xff]  ;;  %v93_v57 = vld [vmem:[%s3714_s2 + $0x1b8] sm:$0xff]  ;;  %v3261_v58 = vpack.c.bf16 %v84_v46, %v80_v45  ;;  %v90_v61 = vld [vmem:[%s3714_s2 + $0x1a0] sm:$0xff]  ;;  %v3271_v62 = vpack.c.bf16 %v91_v51, %v87_v49  ;;  %v404_v31 = vsub.s32 0, %v403_v30  ;;  %v408_v34 = vsub.s32 1, %v403_v30 }
  0x2a   :  { %358 = vmatmul.mubr.f32.gmra.mrb[2].mxu1 %v103_v59  ;;  %2069 = vmatpush1.bf16.msra.mxu0 %v3087_v60  ;;  %v86_v59 = vld [vmem:[%s3714_s2 + $0x180] sm:$0xff]  ;;  %v88_v0 = vld [vmem:[%s3714_s2 + $0x190] sm:$0xff]  ;;  %v3280_v4 = vpack.c.bf16 %v93_v57, %v89_v55  ;;  %v95_v5 = vld [vmem:[%s3714_s2 + $0x1c8] sm:$0xff] }
  0x2b   :  { %2101 = vmatpush1.bf16.msra.mxu1 %v3097_v63  ;;  %250 = vmatprep.mubr.f32.mxu0 %v2767_v3  ;;  %v92_v1 = vld [vmem:[%s3714_s2 + $0x1b0] sm:$0xff]  ;;  %v99_v7 = vld [vmem:[%s3714_s2 + $0x1e8] sm:$0xff]  ;;  %v97_v11 = vld [vmem:[%s3714_s2 + $0x1d8] sm:$0xff] }
  0x2c   :  { %363 = vmatprep.mubr.f32.mxu1 %v2767_v3  ;;  %2071 = vmatprep.subr.bf16.mxu0 %v3107_v2  ;;  %v108_v8 = vld [vmem:[%s3715_s0 + $0x30] sm:$0xff]  ;;  %v101_v12 = vld [vmem:[%s3714_s2 + $0x1f8] sm:$0xff]  ;;  %v3302_v14 = vpack.c.bf16 %v92_v1, %v88_v0  ;;  %v94_v15 = vld [vmem:[%s3714_s2 + $0x1c0] sm:$0xff]  ;;  %v3312_v18 = vpack.c.bf16 %v99_v7, %v95_v5  ;;  %v412_v7 = vsub.s32 2, %v403_v30 }
  0x2d   :  { %251 = vmatmul.mubr.f32.gmra.mrb[4].mxu0 %v104_v9  ;;  %2103 = vmatprep.subr.bf16.mxu1 %v3116_v6  ;;  %v98_v17 = vld [vmem:[%s3714_s2 + $0x1e0] sm:$0xff]  ;;  %v96_v20 = vld [vmem:[%s3714_s2 + $0x1d0] sm:$0xff]  ;;  %v109_v24 = vld [vmem:[%s3715_s0 + $0x38] sm:$0xff] }
  0x2e   :  { %364 = vmatmul.mubr.f32.gmra.mrb[4].mxu1 %v104_v9  ;;  %2073 = vmatpush1.bf16.msra.mxu0 %v3128_v10  ;;  %v3292_v9 = vpack.c.bf16 %v90_v61, %v86_v59  ;;  %v100_v21 = vld [vmem:[%s3714_s2 + $0x1f0] sm:$0xff]  ;;  %v3327_v25 = vpack.c.bf16 %v98_v17, %v94_v15  ;;  %v400_v33 = vld [vmem:[%s3716_s4] sm:$0xf] }
  0x2f   :  { %2105 = vmatpush1.bf16.msra.mxu1 %v3138_v13  ;;  %256 = vmatprep.mubr.f32.mxu0 %v2767_v3  ;;  %v3331_v27 = vpack.c.bf16 %v100_v21, %v96_v20  ;;  %v3387_v37 = vld [vmem:[%s3718_s5] ss:$0 sm:$0xff]  ;;  %v3389_v39 = vrot.slane %v400_v33, %v404_v31  ;;  %v3396_v43 = vrot.slane %v400_v33, %v408_v34  ;;  %v416_v21 = vsub.s32 3, %v403_v30 }
  0x30   :  { %369 = vmatprep.mubr.f32.mxu1 %v2767_v3  ;;  %2075 = vmatprep.subr.bf16.mxu0 %v3148_v16  ;;  %v3394_v42 = vld [vmem:[%s3719_s6] ss:$0 sm:$0xff] }
  0x31   :  { %257 = vmatmul.mubr.f32.gmra.mrb[6].mxu0 %v105_v22  ;;  %2107 = vmatprep.subr.bf16.mxu1 %v3157_v19 }
  0x32   :  { %370 = vmatmul.mubr.f32.gmra.mrb[6].mxu1 %v105_v22  ;;  %2077 = vmatpush1.bf16.msra.mxu0 %v3169_v23  ;;  %v3321_v22 = vpack.c.bf16 %v101_v12, %v97_v11 }
  0x33   :  { %2109 = vmatpush1.bf16.msra.mxu1 %v3179_v26  ;;  %262 = vmatprep.mubr.f32.mxu0 %v2767_v3 }
  0x34   :  { %375 = vmatprep.mubr.f32.mxu1 %v2767_v3  ;;  %2079 = vmatprep.subr.bf16.mxu0 %v3189_v29 }
  0x35   :  { %263 = vmatmul.mubr.f32.gmra.mrb[8].mxu0 %v106_v35  ;;  %2111 = vmatprep.subr.bf16.mxu1 %v3198_v32 }
  0x36   :  { %376 = vmatmul.mubr.f32.gmra.mrb[8].mxu1 %v106_v35  ;;  %2081 = vmatpush1.bf16.msra.mxu0 %v3210_v36  ;;  %v36_v35 = vld [vmem:[%s3717_s1] sm:$0xff] }
  0x37   :  { %2113 = vmatpush1.bf16.msra.mxu1 %v3220_v40  ;;  %268 = vmatprep.mubr.f32.mxu0 %v2767_v3  ;;  %v659_v45 = vmul.f32 %v3387_v37, %v36_v35  ;;  %v667_v49 = vmul.f32 %v3394_v42, %v36_v35 }
  0x38   :  { %381 = vmatprep.mubr.f32.mxu1 %v2767_v3  ;;  %2083 = vmatprep.subr.bf16.mxu0 %v3230_v44 }
  0x39   :  { %269 = vmatmul.mubr.f32.gmra.mrb[10].mxu0 %v107_v52  ;;  %2115 = vmatprep.subr.bf16.mxu1 %v3239_v48 }
  0x3a   :  { %382 = vmatmul.mubr.f32.gmra.mrb[10].mxu1 %v107_v52  ;;  %2085 = vmatpush1.bf16.msra.mxu0 %v3251_v54 }
  0x3b   :  { %2117 = vmatpush1.bf16.msra.mxu1 %v3261_v58  ;;  %274 = vmatprep.mubr.f32.mxu0 %v2767_v3 }
  0x3c   :  { %387 = vmatprep.mubr.f32.mxu1 %v2767_v3  ;;  %2087 = vmatprep.subr.bf16.mxu0 %v3271_v62 }
  0x3d   :  { %275 = vmatmul.mubr.f32.gmra.mrb[12].mxu0 %v108_v8  ;;  %2119 = vmatprep.subr.bf16.mxu1 %v3280_v4 }
  0x3e   :  { %388 = vmatmul.mubr.f32.gmra.mrb[12].mxu1 %v108_v8  ;;  %2089 = vmatpush1.bf16.msra.mxu0 %v3292_v9  ;;  %v3402_v8 = vrot.slane %v400_v33, %v412_v7 }
  0x3f   :  { %2121 = vmatpush1.bf16.msra.mxu1 %v3302_v14  ;;  %280 = vmatprep.mubr.f32.mxu0 %v2767_v3 }
  0x40   :  { %393 = vmatprep.mubr.f32.mxu1 %v2767_v3  ;;  %2091 = vmatprep.subr.bf16.mxu0 %v3312_v18 }
  0x41   :  { %281 = vmatmul.mubr.f32.gmra.mrb[14].mxu0 %v109_v24  ;;  %2123 = vmatprep.subr.bf16.mxu1 %v3321_v22 }
  0x42   :  { %394 = vmatmul.mubr.f32.gmra.mrb[14].mxu1 %v109_v24  ;;  %2093 = vmatpush1.bf16.msra.mxu0 %v3327_v25 }
  0x43   :  { %2125 = vmatpush1.bf16.msra.mxu1 %v3331_v27  ;;  %577 = vmatprep.mubr.f32.mxu0 %v2767_v3 }
  0x44   :  { %648 = vmatprep.mubr.f32.mxu1 %v2767_v3  ;;  %2127 = vmatprep.subr.bf16.mxu0 %v3024_v38 }
  0x45   :  { %578 = vmatmul.mubr.f32.vlgmr.msra.gmra.mrb[0].mxu0 %v2767_v3  ;;  %2159 = vmatprep.subr.bf16.mxu1 %v3032_v41 }
  0x46   :  { %649 = vmatmul.mubr.f32.vlgmr.msra.gmra.mrb[0].mxu1 %v2767_v3  ;;  %2129 = vmatpush1.bf16.msra.mxu0 %v3049_v47 }
  0x47   :  { %2161 = vmatpush1.bf16.msra.mxu1 %v3058_v50  ;;  %2131 = vmatprep.subr.bf16.mxu0 %v3067_v53 }
  0x48   :  { %2163 = vmatprep.subr.bf16.mxu1 %v3075_v56  ;;  %758 = vmatprep.mubr.f32.mxu0 %v2767_v3 }
  0x49   :  { %829 = vmatprep.mubr.f32.mxu1 %v2767_v3 }
  0x4a   :  { %2133 = vmatpush1.bf16.msra.mxu0 %v3087_v60 }
  0x4b   :  { %2165 = vmatpush1.bf16.msra.mxu1 %v3097_v63  ;;  %2135 = vmatprep.subr.bf16.mxu0 %v3107_v2 }
  0x4c   :  { %2167 = vmatprep.subr.bf16.mxu1 %v3116_v6 }
  0x4e   :  { %2137 = vmatpush1.bf16.msra.mxu0 %v3128_v10 }
  0x4f   :  { %2169 = vmatpush1.bf16.msra.mxu1 %v3138_v13  ;;  %2139 = vmatprep.subr.bf16.mxu0 %v3148_v16 }
  0x50   :  { %2171 = vmatprep.subr.bf16.mxu1 %v3157_v19 }
  0x52   :  { %2141 = vmatpush1.bf16.msra.mxu0 %v3169_v23 }
  0x53   :  { %2173 = vmatpush1.bf16.msra.mxu1 %v3179_v26  ;;  %2143 = vmatprep.subr.bf16.mxu0 %v3189_v29 }
  0x54   :  { %2175 = vmatprep.subr.bf16.mxu1 %v3198_v32 }
  0x56   :  { %2145 = vmatpush1.bf16.msra.mxu0 %v3210_v36 }
  0x57   :  { %2177 = vmatpush1.bf16.msra.mxu1 %v3220_v40  ;;  %2147 = vmatprep.subr.bf16.mxu0 %v3230_v44 }
  0x58   :  { %2179 = vmatprep.subr.bf16.mxu1 %v3239_v48 }
  0x5a   :  { %2149 = vmatpush1.bf16.msra.mxu0 %v3251_v54 }
  0x5b   :  { %2181 = vmatpush1.bf16.msra.mxu1 %v3261_v58  ;;  %2151 = vmatprep.subr.bf16.mxu0 %v3271_v62 }
  0x5c   :  { %2183 = vmatprep.subr.bf16.mxu1 %v3280_v4 }
  0x5e   :  { %2153 = vmatpush1.bf16.msra.mxu0 %v3292_v9 }
  0x5f   :  { %2185 = vmatpush1.bf16.msra.mxu1 %v3302_v14  ;;  %2155 = vmatprep.subr.bf16.mxu0 %v3312_v18 }
  0x60   :  { %2187 = vmatprep.subr.bf16.mxu1 %v3321_v22 }
  0x62   :  { %2157 = vmatpush1.bf16.msra.mxu0 %v3327_v25 }
  0x63   :  { %2189 = vmatpush1.bf16.msra.mxu1 %v3331_v27  ;;  %2191 = vmatprep.subr.bf16.mxu0 %v3024_v38 }
  0x64   :  { %2223 = vmatprep.subr.bf16.mxu1 %v3032_v41 }
 0x118   :  { %v579_v46 = vpop.f32.mrb[0].mxu0 }
 0x119   :  { %v2574_v51 = vadd.f32 %v579_v46, %v3389_v39  ;;  %v650_v52 = vpop.f32.mrb[0].mxu1  ;;  %v581_v55 = vpop.f32.mrb[1].mxu0  ;;  %v3405_v46 = vrot.slane %v400_v33, %v416_v21 }
 0x11a   :  { %v2575_v57 = vadd.f32 %v581_v55, %v3396_v43  ;;  %v652_v59 = vpop.f32.mrb[1].mxu1  ;;  %v2590_v11 = vadd.f32 %v650_v52, %v3402_v8 }
 0x11b   :  { %v660_v61 = vadd.f32 %v2574_v51, %v659_v45  ;;  %v2591_v52 = vadd.f32 %v652_v59, %v3405_v46 }
 0x11c   :  { %v668_v0 = vadd.f32 %v2575_v57, %v667_v49  ;;  %v3410_v49 = vld [vmem:[%s3720_s7] ss:$0 sm:$0xff] }
 0x11d   :  { %v1974_v1 = vmul.f32 -1.442695, %v660_v61 }
 0x11e   :  { %v1975_v5 = vmul.f32 -1.442695, %v668_v0 }
 0x11f   :  { %2639 = vpow2.f32 %v1974_v1 }
 0x120   :  { %2641 = vpow2.f32 %v1975_v5 }
 0x121   :  { %2643 = vtanh.f32 %v2590_v11 }
 0x129   :  { %v2640_v12 = vpop.eup %2639 }
 0x12a   :  { %v2642_v15 = vpop.eup %2641  ;;  %v664_v17 = vadd.f32 1.0, %v2640_v12 }
 0x12b   :  { %v672_v20 = vadd.f32 1.0, %v2642_v15  ;;  %v2644_v24 = vpop.eup %2643 }
 0x12c   :  { %2645 = vrcp.f32 %v664_v17 }
 0x12d   :  { %2647 = vrcp.f32 %v672_v20 }
 0x136   :  { %v2646_v28 = vpop.eup %2645 }
 0x137   :  { %v2648_v31 = vpop.eup %2647  ;;  %v677_v34 = vmul.f32 %v2646_v28, %v2644_v24 }
 0x138   :  { %v676_v45 = vmul.f32 %v2648_v31, %v36_v35 }
 0x13a   :  { %v3412_v51 = vadd.f32 %v677_v34, %v676_v45 }
 0x13c   :  { %v679_v55 = vmul.f32 %v3410_v49, %v3412_v51  ;;  %v840_v11 = vmul.f32 %v3387_v37, %v3412_v51  ;;  %v848_v20 = vmul.f32 %v3394_v42, %v3412_v51 }
 0x13e   :  { %v680_v30 = vadd.f32 %v2591_v52, %v679_v55 }
 0x140   :  { %v1976_v57 = vmul.f32 -1.442695, %v680_v30 }
 0x142   :  { %2649 = vpow2.f32 %v1976_v57 }
 0x143   :  { %2651 = vtanh.f32 %v3412_v51 }
 0x14c   :  { %v2650_v61 = vpop.eup %2649 }
 0x14d   :  { %v684_v0 = vadd.f32 1.0, %v2650_v61  ;;  %v2652_v33 = vpop.eup %2651 }
 0x14f   :  { %2653 = vrcp.f32 %v684_v0 }
 0x159   :  { %v2654_v35 = vpop.eup %2653 }
 0x15a   :  { %v688_v1 = vmul.f32 %v2654_v35, %v2652_v33 }
 0x15c   :  { %759 = vmatmul.mubr.f32.vlgmr.msra.gmra.mrb[2].mxu0 %v688_v1  ;;  %830 = vmatmul.mubr.f32.vlgmr.msra.gmra.mrb[2].mxu1 %v688_v1 }
 0x15d   :  { %2193 = vmatpush1.bf16.msra.mxu0 %v3049_v47  ;;  %2225 = vmatpush1.bf16.msra.mxu1 %v3058_v50 }
 0x15e   :  { %2195 = vmatprep.subr.bf16.mxu0 %v3067_v53  ;;  %2227 = vmatprep.subr.bf16.mxu1 %v3075_v56 }
 0x15f   :  { %939 = vmatprep.mubr.f32.mxu0 %v2767_v3  ;;  %1010 = vmatprep.mubr.f32.mxu1 %v2767_v3 }
 0x161   :  { %2197 = vmatpush1.bf16.msra.mxu0 %v3087_v60  ;;  %2229 = vmatpush1.bf16.msra.mxu1 %v3097_v63 }
 0x162   :  { %2199 = vmatprep.subr.bf16.mxu0 %v3107_v2  ;;  %2231 = vmatprep.subr.bf16.mxu1 %v3116_v6 }
 0x165   :  { %2201 = vmatpush1.bf16.msra.mxu0 %v3128_v10  ;;  %2233 = vmatpush1.bf16.msra.mxu1 %v3138_v13 }
 0x166   :  { %2203 = vmatprep.subr.bf16.mxu0 %v3148_v16  ;;  %2235 = vmatprep.subr.bf16.mxu1 %v3157_v19 }
 0x169   :  { %2205 = vmatpush1.bf16.msra.mxu0 %v3169_v23  ;;  %2237 = vmatpush1.bf16.msra.mxu1 %v3179_v26 }
 0x16a   :  { %2207 = vmatprep.subr.bf16.mxu0 %v3189_v29  ;;  %2239 = vmatprep.subr.bf16.mxu1 %v3198_v32 }
 0x16d   :  { %2209 = vmatpush1.bf16.msra.mxu0 %v3210_v36  ;;  %2241 = vmatpush1.bf16.msra.mxu1 %v3220_v40 }
 0x16e   :  { %2211 = vmatprep.subr.bf16.mxu0 %v3230_v44  ;;  %2243 = vmatprep.subr.bf16.mxu1 %v3239_v48 }
 0x171   :  { %2213 = vmatpush1.bf16.msra.mxu0 %v3251_v54  ;;  %2245 = vmatpush1.bf16.msra.mxu1 %v3261_v58 }
 0x172   :  { %2215 = vmatprep.subr.bf16.mxu0 %v3271_v62  ;;  %2247 = vmatprep.subr.bf16.mxu1 %v3280_v4 }
 0x175   :  { %2217 = vmatpush1.bf16.msra.mxu0 %v3292_v9  ;;  %2249 = vmatpush1.bf16.msra.mxu1 %v3302_v14 }
 0x176   :  { %2219 = vmatprep.subr.bf16.mxu0 %v3312_v18  ;;  %2251 = vmatprep.subr.bf16.mxu1 %v3321_v22 }
 0x179   :  { %2221 = vmatpush1.bf16.msra.mxu0 %v3327_v25  ;;  %2253 = vmatpush1.bf16.msra.mxu1 %v3331_v27 }
 0x17a   :  { %2255 = vmatprep.subr.bf16.mxu0 %v3024_v38  ;;  %2287 = vmatprep.subr.bf16.mxu1 %v3032_v41 }
 0x22f   :  { %v760_v59 = vpop.f32.mrb[2].mxu0  ;;  %v831_v5 = vpop.f32.mrb[2].mxu1 }
 0x230   :  { %v2576_v7 = vadd.f32 %v760_v59, %v3389_v39  ;;  %v762_v12 = vpop.f32.mrb[3].mxu0  ;;  %v833_v15 = vpop.f32.mrb[3].mxu1  ;;  %v2592_v34 = vadd.f32 %v831_v5, %v3402_v8 }
 0x231   :  { %v2577_v17 = vadd.f32 %v762_v12, %v3396_v43  ;;  %v2593_v59 = vadd.f32 %v833_v15, %v3405_v46 }
 0x232   :  { %v841_v21 = vadd.f32 %v2576_v7, %v840_v11 }
 0x233   :  { %v849_v24 = vadd.f32 %v2577_v17, %v848_v20 }
 0x234   :  { %v1977_v28 = vmul.f32 -1.442695, %v841_v21 }
 0x235   :  { %v1978_v31 = vmul.f32 -1.442695, %v849_v24 }
 0x236   :  { %2655 = vpow2.f32 %v1977_v28 }
 0x237   :  { %2657 = vpow2.f32 %v1978_v31 }
 0x238   :  { %2659 = vtanh.f32 %v2592_v34 }
 0x240   :  { %v2656_v45 = vpop.eup %2655 }
 0x241   :  { %v2658_v52 = vpop.eup %2657  ;;  %v845_v55 = vadd.f32 1.0, %v2656_v45 }
 0x242   :  { %v853_v30 = vadd.f32 1.0, %v2658_v52  ;;  %v2660_v57 = vpop.eup %2659 }
 0x243   :  { %2661 = vrcp.f32 %v845_v55 }
 0x244   :  { %2663 = vrcp.f32 %v853_v30 }
 0x24d   :  { %v2662_v61 = vpop.eup %2661 }
 0x24e   :  { %v2664_v0 = vpop.eup %2663  ;;  %v858_v33 = vmul.f32 %v2662_v61, %v2660_v57 }
 0x24f   :  { %v857_v35 = vmul.f32 %v2664_v0, %v3412_v51 }
 0x251   :  { %v3460_v1 = vadd.f32 %v858_v33, %v857_v35 }
 0x253   :  { %v860_v5 = vmul.f32 %v3410_v49, %v3460_v1  ;;  %v1021_v31 = vmul.f32 %v3387_v37, %v3460_v1  ;;  %v1029_v55 = vmul.f32 %v3394_v42, %v3460_v1 }
 0x255   :  { %v861_v7 = vadd.f32 %v2593_v59, %v860_v5 }
 0x257   :  { %v1979_v11 = vmul.f32 -1.442695, %v861_v7 }
 0x259   :  { %2665 = vpow2.f32 %v1979_v11 }
 0x25a   :  { %2667 = vtanh.f32 %v3460_v1 }
 0x263   :  { %v2666_v12 = vpop.eup %2665 }
 0x264   :  { %v865_v17 = vadd.f32 1.0, %v2666_v12  ;;  %v2668_v20 = vpop.eup %2667 }
 0x266   :  { %2669 = vrcp.f32 %v865_v17 }
 0x270   :  { %v2670_v21 = vpop.eup %2669 }
 0x271   :  { %v869_v24 = vmul.f32 %v2670_v21, %v2668_v20 }
 0x273   :  { %940 = vmatmul.mubr.f32.vlgmr.msra.gmra.mrb[4].mxu0 %v869_v24  ;;  %1011 = vmatmul.mubr.f32.vlgmr.msra.gmra.mrb[4].mxu1 %v869_v24 }
 0x274   :  { %2257 = vmatpush1.bf16.msra.mxu0 %v3049_v47  ;;  %2289 = vmatpush1.bf16.msra.mxu1 %v3058_v50 }
 0x275   :  { %2259 = vmatprep.subr.bf16.mxu0 %v3067_v53  ;;  %2291 = vmatprep.subr.bf16.mxu1 %v3075_v56 }
 0x276   :  { %1120 = vmatprep.mubr.f32.mxu0 %v2767_v3  ;;  %1191 = vmatprep.mubr.f32.mxu1 %v2767_v3 }
 0x278   :  { %2261 = vmatpush1.bf16.msra.mxu0 %v3087_v60  ;;  %2293 = vmatpush1.bf16.msra.mxu1 %v3097_v63 }
 0x279   :  { %2263 = vmatprep.subr.bf16.mxu0 %v3107_v2  ;;  %2295 = vmatprep.subr.bf16.mxu1 %v3116_v6 }
 0x27c   :  { %2265 = vmatpush1.bf16.msra.mxu0 %v3128_v10  ;;  %2297 = vmatpush1.bf16.msra.mxu1 %v3138_v13 }
 0x27d   :  { %2267 = vmatprep.subr.bf16.mxu0 %v3148_v16  ;;  %2299 = vmatprep.subr.bf16.mxu1 %v3157_v19 }
 0x280   :  { %2269 = vmatpush1.bf16.msra.mxu0 %v3169_v23  ;;  %2301 = vmatpush1.bf16.msra.mxu1 %v3179_v26 }
 0x281   :  { %2271 = vmatprep.subr.bf16.mxu0 %v3189_v29  ;;  %2303 = vmatprep.subr.bf16.mxu1 %v3198_v32 }
 0x284   :  { %2273 = vmatpush1.bf16.msra.mxu0 %v3210_v36  ;;  %2305 = vmatpush1.bf16.msra.mxu1 %v3220_v40 }
 0x285   :  { %2275 = vmatprep.subr.bf16.mxu0 %v3230_v44  ;;  %2307 = vmatprep.subr.bf16.mxu1 %v3239_v48 }
 0x288   :  { %2277 = vmatpush1.bf16.msra.mxu0 %v3251_v54  ;;  %2309 = vmatpush1.bf16.msra.mxu1 %v3261_v58 }
 0x289   :  { %2279 = vmatprep.subr.bf16.mxu0 %v3271_v62  ;;  %2311 = vmatprep.subr.bf16.mxu1 %v3280_v4 }
 0x28c   :  { %2281 = vmatpush1.bf16.msra.mxu0 %v3292_v9  ;;  %2313 = vmatpush1.bf16.msra.mxu1 %v3302_v14 }
 0x28d   :  { %2283 = vmatprep.subr.bf16.mxu0 %v3312_v18  ;;  %2315 = vmatprep.subr.bf16.mxu1 %v3321_v22 }
 0x290   :  { %2285 = vmatpush1.bf16.msra.mxu0 %v3327_v25  ;;  %2317 = vmatpush1.bf16.msra.mxu1 %v3331_v27 }
 0x291   :  { %2319 = vmatprep.subr.bf16.mxu0 %v3024_v38  ;;  %2351 = vmatprep.subr.bf16.mxu1 %v3032_v41 }
 0x346   :  { %v941_v51 = vpop.f32.mrb[4].mxu0  ;;  %v1012_v15 = vpop.f32.mrb[4].mxu1 }
 0x347   :  { %v2578_v28 = vadd.f32 %v941_v51, %v3389_v39  ;;  %v943_v34 = vpop.f32.mrb[5].mxu0  ;;  %v1014_v45 = vpop.f32.mrb[5].mxu1  ;;  %v2594_v33 = vadd.f32 %v1012_v15, %v3402_v8 }
 0x348   :  { %v2579_v52 = vadd.f32 %v943_v34, %v3396_v43  ;;  %v2595_v51 = vadd.f32 %v1014_v45, %v3405_v46 }
 0x349   :  { %v1022_v30 = vadd.f32 %v2578_v28, %v1021_v31 }
 0x34a   :  { %v1030_v57 = vadd.f32 %v2579_v52, %v1029_v55 }
 0x34b   :  { %v1980_v61 = vmul.f32 -1.442695, %v1022_v30 }
 0x34c   :  { %v1981_v0 = vmul.f32 -1.442695, %v1030_v57 }
 0x34d   :  { %2671 = vpow2.f32 %v1980_v61 }
 0x34e   :  { %2673 = vpow2.f32 %v1981_v0 }
 0x34f   :  { %2675 = vtanh.f32 %v2594_v33 }
 0x357   :  { %v2672_v35 = vpop.eup %2671 }
 0x358   :  { %v2674_v59 = vpop.eup %2673  ;;  %v1026_v5 = vadd.f32 1.0, %v2672_v35 }
 0x359   :  { %v1034_v7 = vadd.f32 1.0, %v2674_v59  ;;  %v2676_v11 = vpop.eup %2675 }
 0x35a   :  { %2677 = vrcp.f32 %v1026_v5 }
 0x35b   :  { %2679 = vrcp.f32 %v1034_v7 }
 0x364   :  { %v2678_v12 = vpop.eup %2677 }
 0x365   :  { %v2680_v17 = vpop.eup %2679  ;;  %v1039_v20 = vmul.f32 %v2678_v12, %v2676_v11 }
 0x366   :  { %v1038_v21 = vmul.f32 %v2680_v17, %v3460_v1 }
 0x368   :  { %v3508_v24 = vadd.f32 %v1039_v20, %v1038_v21 }
 0x36a   :  { %v1041_v15 = vmul.f32 %v3410_v49, %v3508_v24  ;;  %v1202_v0 = vmul.f32 %v3387_v37, %v3508_v24  ;;  %v1210_v5 = vmul.f32 %v3394_v42, %v3508_v24 }
 0x36c   :  { %v1042_v28 = vadd.f32 %v2595_v51, %v1041_v15 }
 0x36e   :  { %v1982_v31 = vmul.f32 -1.442695, %v1042_v28 }
 0x370   :  { %2681 = vpow2.f32 %v1982_v31 }
 0x371   :  { %2683 = vtanh.f32 %v3508_v24 }
 0x37a   :  { %v2682_v34 = vpop.eup %2681 }
 0x37b   :  { %v1046_v52 = vadd.f32 1.0, %v2682_v34  ;;  %v2684_v55 = vpop.eup %2683 }
 0x37d   :  { %2685 = vrcp.f32 %v1046_v52 }
 0x387   :  { %v2686_v30 = vpop.eup %2685 }
 0x388   :  { %v1050_v57 = vmul.f32 %v2686_v30, %v2684_v55 }
 0x38a   :  { %1121 = vmatmul.mubr.f32.vlgmr.msra.gmra.mrb[6].mxu0 %v1050_v57  ;;  %1192 = vmatmul.mubr.f32.vlgmr.msra.gmra.mrb[6].mxu1 %v1050_v57 }
 0x38b   :  { %2321 = vmatpush1.bf16.msra.mxu0 %v3049_v47  ;;  %2353 = vmatpush1.bf16.msra.mxu1 %v3058_v50 }
 0x38c   :  { %2323 = vmatprep.subr.bf16.mxu0 %v3067_v53  ;;  %2355 = vmatprep.subr.bf16.mxu1 %v3075_v56 }
 0x38d   :  { %1301 = vmatprep.mubr.f32.mxu0 %v2767_v3  ;;  %1372 = vmatprep.mubr.f32.mxu1 %v2767_v3 }
 0x38f   :  { %2325 = vmatpush1.bf16.msra.mxu0 %v3087_v60  ;;  %2357 = vmatpush1.bf16.msra.mxu1 %v3097_v63 }
 0x390   :  { %2327 = vmatprep.subr.bf16.mxu0 %v3107_v2  ;;  %2359 = vmatprep.subr.bf16.mxu1 %v3116_v6 }
 0x393   :  { %2329 = vmatpush1.bf16.msra.mxu0 %v3128_v10  ;;  %2361 = vmatpush1.bf16.msra.mxu1 %v3138_v13 }
 0x394   :  { %2331 = vmatprep.subr.bf16.mxu0 %v3148_v16  ;;  %2363 = vmatprep.subr.bf16.mxu1 %v3157_v19 }
 0x397   :  { %2333 = vmatpush1.bf16.msra.mxu0 %v3169_v23  ;;  %2365 = vmatpush1.bf16.msra.mxu1 %v3179_v26 }
 0x398   :  { %2335 = vmatprep.subr.bf16.mxu0 %v3189_v29  ;;  %2367 = vmatprep.subr.bf16.mxu1 %v3198_v32 }
 0x39b   :  { %2337 = vmatpush1.bf16.msra.mxu0 %v3210_v36  ;;  %2369 = vmatpush1.bf16.msra.mxu1 %v3220_v40 }
 0x39c   :  { %2339 = vmatprep.subr.bf16.mxu0 %v3230_v44  ;;  %2371 = vmatprep.subr.bf16.mxu1 %v3239_v48 }
 0x39f   :  { %2341 = vmatpush1.bf16.msra.mxu0 %v3251_v54  ;;  %2373 = vmatpush1.bf16.msra.mxu1 %v3261_v58 }
 0x3a0   :  { %2343 = vmatprep.subr.bf16.mxu0 %v3271_v62  ;;  %2375 = vmatprep.subr.bf16.mxu1 %v3280_v4 }
 0x3a3   :  { %2345 = vmatpush1.bf16.msra.mxu0 %v3292_v9  ;;  %2377 = vmatpush1.bf16.msra.mxu1 %v3302_v14 }
 0x3a4   :  { %2347 = vmatprep.subr.bf16.mxu0 %v3312_v18  ;;  %2379 = vmatprep.subr.bf16.mxu1 %v3321_v22 }
 0x3a7   :  { %2349 = vmatpush1.bf16.msra.mxu0 %v3327_v25  ;;  %2381 = vmatpush1.bf16.msra.mxu1 %v3331_v27 }
 0x3a8   :  { %2383 = vmatprep.subr.bf16.mxu0 %v3024_v38  ;;  %2415 = vmatprep.subr.bf16.mxu1 %v3032_v41 }
 0x45d   :  { %v1122_v1 = vpop.f32.mrb[6].mxu0  ;;  %v1193_v45 = vpop.f32.mrb[6].mxu1 }
 0x45e   :  { %v2580_v61 = vadd.f32 %v1122_v1, %v3389_v39  ;;  %v1124_v33 = vpop.f32.mrb[7].mxu0  ;;  %v1195_v35 = vpop.f32.mrb[7].mxu1  ;;  %v2596_v20 = vadd.f32 %v1193_v45, %v3402_v8 }
 0x45f   :  { %v2581_v59 = vadd.f32 %v1124_v33, %v3396_v43  ;;  %v2597_v1 = vadd.f32 %v1195_v35, %v3405_v46 }
 0x460   :  { %v1203_v7 = vadd.f32 %v2580_v61, %v1202_v0 }
 0x461   :  { %v1211_v11 = vadd.f32 %v2581_v59, %v1210_v5 }
 0x462   :  { %v1983_v12 = vmul.f32 -1.442695, %v1203_v7 }
 0x463   :  { %v1984_v17 = vmul.f32 -1.442695, %v1211_v11 }
 0x464   :  { %2687 = vpow2.f32 %v1983_v12 }
 0x465   :  { %2689 = vpow2.f32 %v1984_v17 }
 0x466   :  { %2691 = vtanh.f32 %v2596_v20 }
 0x46e   :  { %v2688_v21 = vpop.eup %2687 }
 0x46f   :  { %v2690_v51 = vpop.eup %2689  ;;  %v1207_v15 = vadd.f32 1.0, %v2688_v21 }
 0x470   :  { %v1215_v28 = vadd.f32 1.0, %v2690_v51  ;;  %v2692_v31 = vpop.eup %2691 }
 0x471   :  { %2693 = vrcp.f32 %v1207_v15 }
 0x472   :  { %2695 = vrcp.f32 %v1215_v28 }
 0x47b   :  { %v2694_v34 = vpop.eup %2693 }
 0x47c   :  { %v2696_v52 = vpop.eup %2695  ;;  %v1220_v55 = vmul.f32 %v2694_v34, %v2692_v31 }
 0x47d   :  { %v1219_v30 = vmul.f32 %v2696_v52, %v3508_v24 }
 0x47f   :  { %v3556_v57 = vadd.f32 %v1220_v55, %v1219_v30 }
 0x481   :  { %v1222_v45 = vmul.f32 %v3410_v49, %v3556_v57  ;;  %v1383_v17 = vmul.f32 %v3387_v37, %v3556_v57  ;;  %v1391_v15 = vmul.f32 %v3394_v42, %v3556_v57 }
 0x483   :  { %v1223_v61 = vadd.f32 %v2597_v1, %v1222_v45 }
 0x485   :  { %v1985_v0 = vmul.f32 -1.442695, %v1223_v61 }
 0x487   :  { %2697 = vpow2.f32 %v1985_v0 }
 0x488   :  { %2699 = vtanh.f32 %v3556_v57 }
 0x491   :  { %v2698_v33 = vpop.eup %2697 }
 0x492   :  { %v1227_v59 = vadd.f32 1.0, %v2698_v33  ;;  %v2700_v5 = vpop.eup %2699 }
 0x494   :  { %2701 = vrcp.f32 %v1227_v59 }
 0x49e   :  { %v2702_v7 = vpop.eup %2701 }
 0x49f   :  { %v1231_v11 = vmul.f32 %v2702_v7, %v2700_v5 }
 0x4a1   :  { %1302 = vmatmul.mubr.f32.vlgmr.msra.gmra.mrb[8].mxu0 %v1231_v11  ;;  %1373 = vmatmul.mubr.f32.vlgmr.msra.gmra.mrb[8].mxu1 %v1231_v11 }
 0x4a2   :  { %2385 = vmatpush1.bf16.msra.mxu0 %v3049_v47  ;;  %2417 = vmatpush1.bf16.msra.mxu1 %v3058_v50 }
 0x4a3   :  { %2387 = vmatprep.subr.bf16.mxu0 %v3067_v53  ;;  %2419 = vmatprep.subr.bf16.mxu1 %v3075_v56 }
 0x4a4   :  { %1482 = vmatprep.mubr.f32.mxu0 %v2767_v3  ;;  %1553 = vmatprep.mubr.f32.mxu1 %v2767_v3 }
 0x4a6   :  { %2389 = vmatpush1.bf16.msra.mxu0 %v3087_v60  ;;  %2421 = vmatpush1.bf16.msra.mxu1 %v3097_v63 }
 0x4a7   :  { %2391 = vmatprep.subr.bf16.mxu0 %v3107_v2  ;;  %2423 = vmatprep.subr.bf16.mxu1 %v3116_v6 }
 0x4aa   :  { %2393 = vmatpush1.bf16.msra.mxu0 %v3128_v10  ;;  %2425 = vmatpush1.bf16.msra.mxu1 %v3138_v13 }
 0x4ab   :  { %2395 = vmatprep.subr.bf16.mxu0 %v3148_v16  ;;  %2427 = vmatprep.subr.bf16.mxu1 %v3157_v19 }
 0x4ae   :  { %2397 = vmatpush1.bf16.msra.mxu0 %v3169_v23  ;;  %2429 = vmatpush1.bf16.msra.mxu1 %v3179_v26 }
 0x4af   :  { %2399 = vmatprep.subr.bf16.mxu0 %v3189_v29  ;;  %2431 = vmatprep.subr.bf16.mxu1 %v3198_v32 }
 0x4b2   :  { %2401 = vmatpush1.bf16.msra.mxu0 %v3210_v36  ;;  %2433 = vmatpush1.bf16.msra.mxu1 %v3220_v40 }
 0x4b3   :  { %2403 = vmatprep.subr.bf16.mxu0 %v3230_v44  ;;  %2435 = vmatprep.subr.bf16.mxu1 %v3239_v48 }
 0x4b6   :  { %2405 = vmatpush1.bf16.msra.mxu0 %v3251_v54  ;;  %2437 = vmatpush1.bf16.msra.mxu1 %v3261_v58 }
 0x4b7   :  { %2407 = vmatprep.subr.bf16.mxu0 %v3271_v62  ;;  %2439 = vmatprep.subr.bf16.mxu1 %v3280_v4 }
 0x4ba   :  { %2409 = vmatpush1.bf16.msra.mxu0 %v3292_v9  ;;  %2441 = vmatpush1.bf16.msra.mxu1 %v3302_v14 }
 0x4bb   :  { %2411 = vmatprep.subr.bf16.mxu0 %v3312_v18  ;;  %2443 = vmatprep.subr.bf16.mxu1 %v3321_v22 }
 0x4be   :  { %2413 = vmatpush1.bf16.msra.mxu0 %v3327_v25  ;;  %2445 = vmatpush1.bf16.msra.mxu1 %v3331_v27 }
 0x4bf   :  { %2447 = vmatprep.subr.bf16.mxu0 %v3024_v38  ;;  %2479 = vmatprep.subr.bf16.mxu1 %v3032_v41 }
 0x574   :  { %v1303_v24 = vpop.f32.mrb[8].mxu0  ;;  %v1374_v35 = vpop.f32.mrb[8].mxu1 }
 0x575   :  { %v2582_v12 = vadd.f32 %v1303_v24, %v3389_v39  ;;  %v1305_v20 = vpop.f32.mrb[9].mxu0  ;;  %v1376_v21 = vpop.f32.mrb[9].mxu1  ;;  %v2598_v55 = vadd.f32 %v1374_v35, %v3402_v8 }
 0x576   :  { %v2583_v51 = vadd.f32 %v1305_v20, %v3396_v43  ;;  %v2599_v24 = vadd.f32 %v1376_v21, %v3405_v46 }
 0x577   :  { %v1384_v28 = vadd.f32 %v2582_v12, %v1383_v17 }
 0x578   :  { %v1392_v31 = vadd.f32 %v2583_v51, %v1391_v15 }
 0x579   :  { %v1986_v34 = vmul.f32 -1.442695, %v1384_v28 }
 0x57a   :  { %v1987_v52 = vmul.f32 -1.442695, %v1392_v31 }
 0x57b   :  { %2703 = vpow2.f32 %v1986_v34 }
 0x57c   :  { %2705 = vpow2.f32 %v1987_v52 }
 0x57d   :  { %2707 = vtanh.f32 %v2598_v55 }
 0x585   :  { %v2704_v30 = vpop.eup %2703 }
 0x586   :  { %v2706_v1 = vpop.eup %2705  ;;  %v1388_v45 = vadd.f32 1.0, %v2704_v30 }
 0x587   :  { %v1396_v61 = vadd.f32 1.0, %v2706_v1  ;;  %v2708_v0 = vpop.eup %2707 }
 0x588   :  { %2709 = vrcp.f32 %v1388_v45 }
 0x589   :  { %2711 = vrcp.f32 %v1396_v61 }
 0x592   :  { %v2710_v33 = vpop.eup %2709 }
 0x593   :  { %v2712_v59 = vpop.eup %2711  ;;  %v1401_v5 = vmul.f32 %v2710_v33, %v2708_v0 }
 0x594   :  { %v1400_v7 = vmul.f32 %v2712_v59, %v3556_v57 }
 0x596   :  { %v3604_v11 = vadd.f32 %v1401_v5, %v1400_v7 }
 0x598   :  { %v1403_v35 = vmul.f32 %v3410_v49, %v3604_v11  ;;  %v1564_v52 = vmul.f32 %v3387_v37, %v3604_v11  ;;  %v1572_v45 = vmul.f32 %v3394_v42, %v3604_v11 }
 0x59a   :  { %v1404_v12 = vadd.f32 %v2599_v24, %v1403_v35 }
 0x59c   :  { %v1988_v17 = vmul.f32 -1.442695, %v1404_v12 }
 0x59e   :  { %2713 = vpow2.f32 %v1988_v17 }
 0x59f   :  { %2715 = vtanh.f32 %v3604_v11 }
 0x5a8   :  { %v2714_v20 = vpop.eup %2713 }
 0x5a9   :  { %v1408_v51 = vadd.f32 1.0, %v2714_v20  ;;  %v2716_v15 = vpop.eup %2715 }
 0x5ab   :  { %2717 = vrcp.f32 %v1408_v51 }
 0x5b5   :  { %v2718_v28 = vpop.eup %2717 }
 0x5b6   :  { %v1412_v31 = vmul.f32 %v2718_v28, %v2716_v15 }
 0x5b8   :  { %1483 = vmatmul.mubr.f32.vlgmr.msra.gmra.mrb[10].mxu0 %v1412_v31  ;;  %1554 = vmatmul.mubr.f32.vlgmr.msra.gmra.mrb[10].mxu1 %v1412_v31 }
 0x5b9   :  { %2449 = vmatpush1.bf16.msra.mxu0 %v3049_v47  ;;  %2481 = vmatpush1.bf16.msra.mxu1 %v3058_v50 }
 0x5ba   :  { %2451 = vmatprep.subr.bf16.mxu0 %v3067_v53  ;;  %2483 = vmatprep.subr.bf16.mxu1 %v3075_v56 }
 0x5bb   :  { %1663 = vmatprep.mubr.f32.mxu0 %v2767_v3  ;;  %1734 = vmatprep.mubr.f32.mxu1 %v2767_v3 }
 0x5bd   :  { %2453 = vmatpush1.bf16.msra.mxu0 %v3087_v60  ;;  %2485 = vmatpush1.bf16.msra.mxu1 %v3097_v63 }
 0x5be   :  { %2455 = vmatprep.subr.bf16.mxu0 %v3107_v2  ;;  %2487 = vmatprep.subr.bf16.mxu1 %v3116_v6 }
 0x5c1   :  { %2457 = vmatpush1.bf16.msra.mxu0 %v3128_v10  ;;  %2489 = vmatpush1.bf16.msra.mxu1 %v3138_v13 }
 0x5c2   :  { %2459 = vmatprep.subr.bf16.mxu0 %v3148_v16  ;;  %2491 = vmatprep.subr.bf16.mxu1 %v3157_v19 }
 0x5c5   :  { %2461 = vmatpush1.bf16.msra.mxu0 %v3169_v23  ;;  %2493 = vmatpush1.bf16.msra.mxu1 %v3179_v26 }
 0x5c6   :  { %2463 = vmatprep.subr.bf16.mxu0 %v3189_v29  ;;  %2495 = vmatprep.subr.bf16.mxu1 %v3198_v32 }
 0x5c9   :  { %2465 = vmatpush1.bf16.msra.mxu0 %v3210_v36  ;;  %2497 = vmatpush1.bf16.msra.mxu1 %v3220_v40 }
 0x5ca   :  { %2467 = vmatprep.subr.bf16.mxu0 %v3230_v44  ;;  %2499 = vmatprep.subr.bf16.mxu1 %v3239_v48 }
 0x5cd   :  { %2469 = vmatpush1.bf16.msra.mxu0 %v3251_v54  ;;  %2501 = vmatpush1.bf16.msra.mxu1 %v3261_v58 }
 0x5ce   :  { %2471 = vmatprep.subr.bf16.mxu0 %v3271_v62  ;;  %2503 = vmatprep.subr.bf16.mxu1 %v3280_v4 }
 0x5d1   :  { %2473 = vmatpush1.bf16.msra.mxu0 %v3292_v9  ;;  %2505 = vmatpush1.bf16.msra.mxu1 %v3302_v14 }
 0x5d2   :  { %2475 = vmatprep.subr.bf16.mxu0 %v3312_v18  ;;  %2507 = vmatprep.subr.bf16.mxu1 %v3321_v22 }
 0x5d5   :  { %2477 = vmatpush1.bf16.msra.mxu0 %v3327_v25  ;;  %2509 = vmatpush1.bf16.msra.mxu1 %v3331_v27 }
 0x5d6   :  { %2511 = vmatprep.subr.bf16.mxu0 %v3024_v38  ;;  %2543 = vmatprep.subr.bf16.mxu1 %v3032_v41 }
 0x68b   :  { %v1484_v57 = vpop.f32.mrb[10].mxu0  ;;  %v1555_v21 = vpop.f32.mrb[10].mxu1 }
 0x68c   :  { %v2584_v34 = vadd.f32 %v1484_v57, %v3389_v39  ;;  %v1486_v55 = vpop.f32.mrb[11].mxu0  ;;  %v1557_v30 = vpop.f32.mrb[11].mxu1  ;;  %v2600_v41 = vadd.f32 %v1555_v21, %v3402_v8 }
 0x68d   :  { %v2585_v1 = vadd.f32 %v1486_v55, %v3396_v43  ;;  %v2601_v28 = vadd.f32 %v1557_v30, %v3405_v46 }
 0x68e   :  { %v1565_v61 = vadd.f32 %v2584_v34, %v1564_v52 }
 0x68f   :  { %v1573_v0 = vadd.f32 %v2585_v1, %v1572_v45 }
 0x690   :  { %v1989_v33 = vmul.f32 -1.442695, %v1565_v61 }
 0x691   :  { %v1990_v38 = vmul.f32 -1.442695, %v1573_v0 }
 0x692   :  { %2719 = vpow2.f32 %v1989_v33 }
 0x693   :  { %2721 = vpow2.f32 %v1990_v38 }
 0x694   :  { %2723 = vtanh.f32 %v2600_v41 }
 0x69c   :  { %v2720_v59 = vpop.eup %2719 }
 0x69d   :  { %v2722_v5 = vpop.eup %2721  ;;  %v1569_v7 = vadd.f32 1.0, %v2720_v59 }
 0x69e   :  { %v1577_v24 = vadd.f32 1.0, %v2722_v5  ;;  %v2724_v35 = vpop.eup %2723 }
 0x69f   :  { %2725 = vrcp.f32 %v1569_v7 }
 0x6a0   :  { %2727 = vrcp.f32 %v1577_v24 }
 0x6a9   :  { %v2726_v12 = vpop.eup %2725 }
 0x6aa   :  { %v2728_v17 = vpop.eup %2727  ;;  %v1582_v20 = vmul.f32 %v2726_v12, %v2724_v35 }
 0x6ab   :  { %v1581_v51 = vmul.f32 %v2728_v17, %v3604_v11 }
 0x6ad   :  { %v3652_v15 = vadd.f32 %v1582_v20, %v1581_v51 }
 0x6af   :  { %v1584_v31 = vmul.f32 %v3410_v49, %v3652_v15 }
 0x6b1   :  { %v1585_v57 = vadd.f32 %v2601_v28, %v1584_v31 }
 0x6b3   :  { %v1991_v21 = vmul.f32 -1.442695, %v1585_v57 }
 0x6b5   :  { %2729 = vpow2.f32 %v1991_v21 }
 0x6b6   :  { %2731 = vtanh.f32 %v3652_v15 }
 0x6bf   :  { %v2730_v34 = vpop.eup %2729 }
 0x6c0   :  { %v1589_v52 = vadd.f32 1.0, %v2730_v34  ;;  %v2732_v55 = vpop.eup %2731 }
 0x6c2   :  { %2733 = vrcp.f32 %v1589_v52 }
 0x6cc   :  { %v2734_v1 = vpop.eup %2733 }
 0x6cd   :  { %v1593_v45 = vmul.f32 %v2734_v1, %v2732_v55 }
 0x6cf   :  { %1664 = vmatmul.mubr.f32.vlgmr.msra.gmra.mrb[12].mxu0 %v1593_v45  ;;  %1735 = vmatmul.mubr.f32.vlgmr.msra.gmra.mrb[12].mxu1 %v1593_v45 }
 0x6d0   :  { %2513 = vmatpush1.bf16.msra.mxu0 %v3049_v47  ;;  %2545 = vmatpush1.bf16.msra.mxu1 %v3058_v50 }
 0x6d1   :  { %2515 = vmatprep.subr.bf16.mxu0 %v3067_v53  ;;  %2547 = vmatprep.subr.bf16.mxu1 %v3075_v56  ;;  %v1745_v53 = vmul.f32 %v3387_v37, %v3652_v15 }
 0x6d2   :  { %1844 = vmatprep.mubr.f32.mxu0 %v2767_v3  ;;  %1915 = vmatprep.mubr.f32.mxu1 %v2767_v3 }
 0x6d4   :  { %2517 = vmatpush1.bf16.msra.mxu0 %v3087_v60  ;;  %2549 = vmatpush1.bf16.msra.mxu1 %v3097_v63 }
 0x6d5   :  { %2519 = vmatprep.subr.bf16.mxu0 %v3107_v2  ;;  %2551 = vmatprep.subr.bf16.mxu1 %v3116_v6  ;;  %v1753_v2 = vmul.f32 %v3394_v42, %v3652_v15 }
 0x6d8   :  { %2521 = vmatpush1.bf16.msra.mxu0 %v3128_v10  ;;  %2553 = vmatpush1.bf16.msra.mxu1 %v3138_v13 }
 0x6d9   :  { %2523 = vmatprep.subr.bf16.mxu0 %v3148_v16  ;;  %2555 = vmatprep.subr.bf16.mxu1 %v3157_v19 }
 0x6dc   :  { %2525 = vmatpush1.bf16.msra.mxu0 %v3169_v23  ;;  %2557 = vmatpush1.bf16.msra.mxu1 %v3179_v26 }
 0x6dd   :  { %2527 = vmatprep.subr.bf16.mxu0 %v3189_v29  ;;  %2559 = vmatprep.subr.bf16.mxu1 %v3198_v32 }
 0x6e0   :  { %2529 = vmatpush1.bf16.msra.mxu0 %v3210_v36  ;;  %2561 = vmatpush1.bf16.msra.mxu1 %v3220_v40 }
 0x6e1   :  { %2531 = vmatprep.subr.bf16.mxu0 %v3230_v44  ;;  %2563 = vmatprep.subr.bf16.mxu1 %v3239_v48 }
 0x6e4   :  { %2533 = vmatpush1.bf16.msra.mxu0 %v3251_v54  ;;  %2565 = vmatpush1.bf16.msra.mxu1 %v3261_v58 }
 0x6e5   :  { %2535 = vmatprep.subr.bf16.mxu0 %v3271_v62  ;;  %2567 = vmatprep.subr.bf16.mxu1 %v3280_v4 }
 0x6e8   :  { %2537 = vmatpush1.bf16.msra.mxu0 %v3292_v9  ;;  %2569 = vmatpush1.bf16.msra.mxu1 %v3302_v14 }
 0x6e9   :  { %2539 = vmatprep.subr.bf16.mxu0 %v3312_v18  ;;  %2571 = vmatprep.subr.bf16.mxu1 %v3321_v22 }
 0x6ec   :  { %2541 = vmatpush1.bf16.msra.mxu0 %v3327_v25  ;;  %2573 = vmatpush1.bf16.msra.mxu1 %v3331_v27 }
 0x7a2   :  { %v1665_v3 = vpop.f32.mrb[12].mxu0  ;;  %v1736_v47 = vpop.f32.mrb[12].mxu1 }
 0x7a3   :  { %v2586_v50 = vadd.f32 %v1665_v3, %v3389_v39  ;;  %v1667_v56 = vpop.f32.mrb[13].mxu0  ;;  %v1738_v60 = vpop.f32.mrb[13].mxu1  ;;  %v2602_v19 = vadd.f32 %v1736_v47, %v3402_v8 }
 0x7a4   :  { %v2587_v63 = vadd.f32 %v1667_v56, %v3396_v43  ;;  %v2603_v62 = vadd.f32 %v1738_v60, %v3405_v46 }
 0x7a5   :  { %v1746_v6 = vadd.f32 %v2586_v50, %v1745_v53 }
 0x7a6   :  { %v1754_v10 = vadd.f32 %v2587_v63, %v1753_v2 }
 0x7a7   :  { %v1992_v13 = vmul.f32 -1.442695, %v1746_v6 }
 0x7a8   :  { %v1993_v16 = vmul.f32 -1.442695, %v1754_v10 }
 0x7a9   :  { %2735 = vpow2.f32 %v1992_v13 }
 0x7aa   :  { %2737 = vpow2.f32 %v1993_v16 }
 0x7ab   :  { %2739 = vtanh.f32 %v2602_v19 }
 0x7b3   :  { %v2736_v23 = vpop.eup %2735 }
 0x7b4   :  { %v2738_v26 = vpop.eup %2737  ;;  %v1750_v29 = vadd.f32 1.0, %v2736_v23 }
 0x7b5   :  { %v1758_v32 = vadd.f32 1.0, %v2738_v26  ;;  %v2740_v36 = vpop.eup %2739 }
 0x7b6   :  { %2741 = vrcp.f32 %v1750_v29 }
 0x7b7   :  { %2743 = vrcp.f32 %v1758_v32 }
 0x7c0   :  { %v2742_v40 = vpop.eup %2741 }
 0x7c1   :  { %v2744_v44 = vpop.eup %2743  ;;  %v1763_v48 = vmul.f32 %v2742_v40, %v2740_v36 }
 0x7c2   :  { %v1762_v54 = vmul.f32 %v2744_v44, %v3652_v15 }
 0x7c4   :  { %v1764_v58 = vadd.f32 %v1763_v48, %v1762_v54 }
 0x7c6   :  { %v1765_v4 = vmul.f32 %v3410_v49, %v1764_v58  ;;  %v1926_v33 = vmul.f32 %v3387_v37, %v1764_v58  ;;  %v1934_v5 = vmul.f32 %v3394_v42, %v1764_v58 }
 0x7c8   :  { %v1766_v9 = vadd.f32 %v2603_v62, %v1765_v4 }
 0x7ca   :  { %v1994_v14 = vmul.f32 -1.442695, %v1766_v9 }
 0x7cc   :  { %2745 = vpow2.f32 %v1994_v14 }
 0x7cd   :  { %2747 = vtanh.f32 %v1764_v58 }
 0x7d6   :  { %v2746_v18 = vpop.eup %2745 }
 0x7d7   :  { %v1770_v22 = vadd.f32 1.0, %v2746_v18  ;;  %v2748_v25 = vpop.eup %2747 }
 0x7d9   :  { %2749 = vrcp.f32 %v1770_v22 }
 0x7e3   :  { %v2750_v27 = vpop.eup %2749 }
 0x7e4   :  { %v1774_v11 = vmul.f32 %v2750_v27, %v2748_v25 }
 0x7e6   :  { %1845 = vmatmul.mubr.f32.vlgmr.msra.gmra.mrb[14].mxu0 %v1774_v11  ;;  %1916 = vmatmul.mubr.f32.vlgmr.msra.gmra.mrb[14].mxu1 %v1774_v11 }
 0x8b9   :  { %v1846_v30 = vpop.f32.mrb[14].mxu0  ;;  %v1917_v61 = vpop.f32.mrb[14].mxu1 }
 0x8ba   :  { %v2588_v0 = vadd.f32 %v1846_v30, %v3389_v39  ;;  %v1848_v38 = vpop.f32.mrb[15].mxu0  ;;  %v1919_v41 = vpop.f32.mrb[15].mxu1  ;;  %v2604_v17 = vadd.f32 %v1917_v61, %v3402_v8 }
 0x8bb   :  { %v2589_v59 = vadd.f32 %v1848_v38, %v3396_v43  ;;  %v2605_v21 = vadd.f32 %v1919_v41, %v3405_v46 }
 0x8bc   :  { %v1927_v7 = vadd.f32 %v2588_v0, %v1926_v33 }
 0x8bd   :  { %v1935_v24 = vadd.f32 %v2589_v59, %v1934_v5 }
 0x8be   :  { %v1995_v35 = vmul.f32 -1.442695, %v1927_v7 }
 0x8bf   :  { %v1996_v12 = vmul.f32 -1.442695, %v1935_v24 }
 0x8c0   :  { %2751 = vpow2.f32 %v1995_v35 }
 0x8c1   :  { %2753 = vpow2.f32 %v1996_v12 }
 0x8c2   :  { %2755 = vtanh.f32 %v2604_v17 }
 0x8ca   :  { %v2752_v20 = vpop.eup %2751 }
 0x8cb   :  { %v2754_v51 = vpop.eup %2753  ;;  %v1931_v15 = vadd.f32 1.0, %v2752_v20 }
 0x8cc   :  { %v1939_v39 = vadd.f32 1.0, %v2754_v51  ;;  %v2756_v37 = vpop.eup %2755 }
 0x8cd   :  { %2757 = vrcp.f32 %v1931_v15 }
 0x8ce   :  { %2759 = vrcp.f32 %v1939_v39 }
 0x8d7   :  { %v2758_v28 = vpop.eup %2757 }
 0x8d8   :  { %v2760_v43 = vpop.eup %2759  ;;  %v1944_v31 = vmul.f32 %v2758_v28, %v2756_v37 }
 0x8d9   :  { %v1943_v42 = vmul.f32 %v2760_v43, %v1764_v58 }
 0x8db   :  { %v1945_v57 = vadd.f32 %v1944_v31, %v1943_v42 }
 0x8dd   :  { %v1946_v34 = vmul.f32 %v3410_v49, %v1945_v57  ;;  %1962 = vst [vmem:[%s3721_s9] sm:$0xff] %v1945_v57 }
 0x8df   :  { %v1947_v8 = vadd.f32 %v2605_v21, %v1946_v34 }
 0x8e1   :  { %v1997_v52 = vmul.f32 -1.442695, %v1947_v8 }
 0x8e3   :  { %2761 = vpow2.f32 %v1997_v52 }
 0x8e4   :  { %2763 = vtanh.f32 %v1945_v57 }
 0x8ed   :  { %v2762_v55 = vpop.eup %2761 }
 0x8ee   :  { %v1951_v1 = vadd.f32 1.0, %v2762_v55  ;;  %v2764_v45 = vpop.eup %2763 }
 0x8f0   :  { %2765 = vrcp.f32 %v1951_v1 }
 0x8fa   :  { %v2766_v3 = vpop.eup %2765 }
 0x8fb   :  { %v1955_v47 = vmul.f32 %v2766_v3, %v2764_v45 }
 0x8fd   :  { %1961 = vst [vmem:[%s3722_s8] sm:$0xff] %v1955_v47 }

</bundles_post_ra>
